<compile_context>
chip_gen: v6e
topology: v6e:2x2x1
jax: 0.10.0
libtpu: 0.0.40
codegen_flags: <defaults>
</compile_context>

<pallas_src>
import functools

import jax
import jax.numpy as jnp
from jax.experimental import pallas as pl
from jax.experimental.pallas import tpu as pltpu

LOG_STD_MIN = -5.0
LOG_STD_MAX = 2.0

HIDDEN = 256      # fc1 / residual-block width
MID = 128         # fc2 output width
HEAD = 128        # fused mean/log_std head, padded to one full lane tile
BLOCK_NUM = 3
# packed bias buffer: b1 + 6 block biases + b2 + fused head bias + log_std lane mask
BIAS_TOTAL = HIDDEN * (1 + 2 * BLOCK_NUM) + MID + HEAD + HEAD   # 2176 (17 lane tiles)
MAX_TILE_B = 1024
K_ALIGN = 128


def _round_up(n, m):
    return ((n + m - 1) // m) * m


def actor_residual_kernel(x_ref, w1_ref, wblk_ref, wtail_ref, b_ref, out_ref, *,
                          elem_bf16):
    """One batch tile of the ActorResidual forward.

    x_ref    : (TB, obs_dim)   f32
    w1_ref   : (obs_dim, 256)  bf16
    wblk_ref : (6, 256, 256)   bf16  [blk0.fc1, blk0.fc2, blk1.fc1, blk1.fc2, blk2.fc1, blk2.fc2]
    wtail_ref: (384, 128)      bf16  rows [0:256)=fc2, rows [256:384)=fused padded heads
    b_ref    : (1, 2176)       f32   packed biases + (1,128) log_std lane mask (128-aligned)
    out_ref  : (TB, 128)       f32   lanes [0:A)=mean, [A:2A)=log_std, rest pass-through
    """
    # bf16 elementwise on v6e/v7x (bf16 VALU): h/residual/bias-add/ReLU in bf16,
    # MXU accumulation stays f32.  f32 elementwise on v5e (no bf16 VALU).
    cdt = jnp.bfloat16 if elem_bf16 else jnp.float32

    def mxu(a, w_bf16):
        # bf16 MXU operands, f32 accumulation.  When `a` is already bf16 the cast is a no-op.
        return jnp.dot(a.astype(jnp.bfloat16), w_bf16,
                       preferred_element_type=jnp.float32)

    def bias(off, n, dtype):
        return b_ref[:, off:off + n].astype(dtype)

    x = x_ref[...]

    # fc1 (no activation after fc1 in the reference forward)
    off = 0
    h = mxu(x, w1_ref[...]).astype(cdt) + bias(off, HIDDEN, cdt)
    off += HIDDEN

    # 3 residual blocks: relu(fc2(relu(fc1(h))) + h)
    for blk in range(BLOCK_NUM):
        residual = h
        t = mxu(h, wblk_ref[2 * blk, :, :]).astype(cdt) + bias(off, HIDDEN, cdt)
        off += HIDDEN
        t = jnp.maximum(t, 0.0)
        t = mxu(t, wblk_ref[2 * blk + 1, :, :]).astype(cdt) + bias(off, HIDDEN, cdt)
        off += HIDDEN
        h = jnp.maximum(t + residual, 0.0)

    # fc2 + relu
    h = jnp.maximum(mxu(h, wtail_ref[0:HIDDEN, :]).astype(cdt) + bias(off, MID, cdt),
                    0.0)
    off += MID

    # fused heads: single lane-dense (TB, 128) matmul, f32 epilogue.
    heads = mxu(h, wtail_ref[HIDDEN:HIDDEN + MID, :]) + bias(off, HEAD, jnp.float32)
    off += HEAD

    # tanh + rescale only on the log_std lanes via a precomputed lane mask
    # (tanh runs on the EUP; blend is 3 VPU ops, no iota/compares per grid step).
    mask = bias(off, HEAD, jnp.float32)
    rescaled = LOG_STD_MIN + 0.5 * (LOG_STD_MAX - LOG_STD_MIN) * (jnp.tanh(heads) + 1.0)
    out_ref[...] = heads + mask * (rescaled - heads)


def pack_params(params, act_dim):
    """Pack the flat (W, b) tuple into 4 kernel arrays (bf16 weights, f32 biases+mask)."""
    p = list(params)
    assert len(p) == 2 * (1 + 2 * BLOCK_NUM + 3)
    w1, b1 = p[0], p[1]
    idx = 2
    blk_ws, blk_bs = [], []
    for _ in range(BLOCK_NUM):
        wa, ba, wb, bb = p[idx:idx + 4]
        idx += 4
        blk_ws += [wa, wb]
        blk_bs += [ba, bb]
    w2, b2, wm, bm, wl, bl = p[idx:idx + 6]
    obs_dim, mid = w1.shape[0], w2.shape[1]
    assert mid == MID and wm.shape[1] == act_dim and 2 * act_dim <= HEAD

    # Lane-align the fc1 contraction only when obs_dim is large (real obs spaces).
    obs_padded = obs_dim if obs_dim <= K_ALIGN else _round_up(obs_dim, K_ALIGN)
    if obs_padded != obs_dim:
        w1 = jnp.concatenate(
            [w1, jnp.zeros((obs_padded - obs_dim, HIDDEN), jnp.float32)], axis=0)

    # Fused, lane-padded head weight / bias.
    whead = jnp.zeros((mid, HEAD), jnp.float32)
    whead = whead.at[:, :act_dim].set(wm).at[:, act_dim:2 * act_dim].set(wl)
    bhead = jnp.zeros((1, HEAD), jnp.float32)
    bhead = bhead.at[:, :act_dim].set(bm).at[:, act_dim:2 * act_dim].set(bl)
    # Lane mask: 1.0 on the log_std lanes, 0.0 elsewhere.
    lmask = jnp.zeros((1, HEAD), jnp.float32).at[:, act_dim:2 * act_dim].set(1.0)

    w1_bf = w1.astype(jnp.bfloat16)                                       # (obs_p, 256)
    wblk_bf = jnp.stack(blk_ws, axis=0).astype(jnp.bfloat16)              # (6, 256, 256)
    wtail_bf = jnp.concatenate([w2, whead], axis=0).astype(jnp.bfloat16)  # (384, 128)
    bias = jnp.concatenate([b1] + blk_bs + [b2, bhead, lmask], axis=1)    # (1, 2176) f32
    assert bias.shape == (1, BIAS_TOTAL)
    return w1_bf, wblk_bf, wtail_bf, bias


def _choose_tiling(batch):
    """Pick (tile_b, padded_b).

    * batch <= 16: one tile (latency path, nothing to shard).
    * batch  > 16: always >= 2 grid steps (keeps both v7x TensorCores busy), tiles up
      to 1024 rows (amortizes ~0.35 us/step grid overhead), minimal zero-row padding.
    """
    if batch <= 16:
        tb = max(8, _round_up(batch, 8))
        return tb, tb
    half = _round_up((batch + 1) // 2, 8)       # exact 2-way split, <=7 rows of padding
    best = None
    for tb in sorted({half, 128, 256, 512, 1024}):
        if tb > MAX_TILE_B:
            continue
        padded = _round_up(batch, tb)
        if padded // tb < 2:
            continue
        score = (padded - batch, -tb)            # least padding, then biggest tile
        if best is None or score < best[0]:
            best = (score, tb, padded)
    _, tb, padded = best
    return tb, padded


def _use_bf16_elementwise():
    """bf16 VALU exists on v6e/v7x; keep elementwise math f32 on v2-v5."""
    try:
        kind = jax.devices()[0].device_kind.lower()
    except Exception:
        return True
    return not any(g in kind for g in ("v2", "v3", "v4", "v5"))


@functools.partial(jax.jit, static_argnames=("act_dim", "elem_bf16"))
def actor_residual_forward(x, packed, act_dim, elem_bf16):
    """x: (B, obs_dim) f32.  packed: output of pack_params."""
    w1, wblk, wtail, bias = packed
    batch, obs_dim = x.shape
    obs_padded = w1.shape[0]
    if obs_padded != obs_dim:
        x = jnp.pad(x, ((0, 0), (0, obs_padded - obs_dim)))

    tile_b, padded_b = _choose_tiling(batch)
    if padded_b != batch:
        x = jnp.pad(x, ((0, padded_b - batch), (0, 0)))
    grid = (padded_b // tile_b,)

    def resident_spec(a):
        # Whole array in VMEM; constant block index => DMA'd once, no per-step copy.
        return pl.BlockSpec(a.shape, lambda i: (0,) * a.ndim)

    out = pl.pallas_call(
        functools.partial(actor_residual_kernel, elem_bf16=elem_bf16),
        out_shape=jax.ShapeDtypeStruct((padded_b, HEAD), jnp.float32),
        grid=grid,
        in_specs=[
            pl.BlockSpec((tile_b, obs_padded), lambda i: (i, 0)),
            resident_spec(w1),
            resident_spec(wblk),
            resident_spec(wtail),
            resident_spec(bias),
        ],
        out_specs=pl.BlockSpec((tile_b, HEAD), lambda i: (i, 0)),
        compiler_params=pltpu.CompilerParams(
            dimension_semantics=("parallel",)),
    )(x, w1, wblk, wtail, bias)

    mean = out[:batch, :act_dim]
    log_std = out[:batch, act_dim:2 * act_dim]
    return mean, log_std


def init_params(key, obs_dim, act_dim, hidden=HIDDEN, mid=MID, block_num=BLOCK_NUM):
    """Deterministic synthetic init. Linear weights stored as (in, out)."""
    params = []

    def linear(key, fan_in, fan_out):
        kw, kb = jax.random.split(key)
        lim = 1.0 / jnp.sqrt(float(fan_in))
        w = jax.random.uniform(kw, (fan_in, fan_out), jnp.float32, -lim, lim)
        b = jax.random.uniform(kb, (1, fan_out), jnp.float32, -lim, lim)
        return w, b

    n_layers = 1 + 2 * block_num + 3
    keys = jax.random.split(key, n_layers)
    ki = iter(keys)

    params.extend(linear(next(ki), obs_dim, hidden))          # fc1
    for _ in range(block_num):
        params.extend(linear(next(ki), hidden, hidden))       # block.fc1
        params.extend(linear(next(ki), hidden, hidden))       # block.fc2
    params.extend(linear(next(ki), hidden, mid))              # fc2
    params.extend(linear(next(ki), mid, act_dim))             # fc_mean
    params.extend(linear(next(ki), mid, act_dim))             # fc_logstd
    return tuple(params)


def reference_forward(x, params, *, mxu_bf16, elem_bf16):
    """Plain-JAX reference mirroring the PyTorch forward.

    mxu_bf16=True mirrors the kernel's quantization path exactly (bf16 matmul operands,
    f32 accumulation, elementwise math in `elem_bf16`'s dtype); mxu_bf16=False is the
    pure-f32 PyTorch-equivalent reference.
    """
    cdt = jnp.bfloat16 if (mxu_bf16 and elem_bf16) else jnp.float32

    def mm(a, w):
        if mxu_bf16:
            return jnp.dot(a.astype(jnp.bfloat16), w.astype(jnp.bfloat16),
                           preferred_element_type=jnp.float32)
        return jnp.dot(a, w)

    p = list(params)
    w1, b1 = p[0], p[1]
    h = mm(x, w1).astype(cdt) + b1.astype(cdt)
    idx = 2
    for _ in range(BLOCK_NUM):
        wa, ba, wb, bb = p[idx:idx + 4]
        idx += 4
        res = h
        t = jnp.maximum(mm(h, wa).astype(cdt) + ba.astype(cdt), 0.0)
        t = mm(t, wb).astype(cdt) + bb.astype(cdt)
        h = jnp.maximum(t + res, 0.0)
    w2, b2, wm, bm, wl, bl = p[idx:idx + 6]
    h = jnp.maximum(mm(h, w2).astype(cdt) + b2.astype(cdt), 0.0)
    mean = mm(h, wm) + bm
    log_std = jnp.tanh(mm(h, wl) + bl)
    log_std = LOG_STD_MIN + 0.5 * (LOG_STD_MAX - LOG_STD_MIN) * (log_std + 1.0)
    return mean.astype(jnp.float32), log_std.astype(jnp.float32)


if __name__ == "__main__":
    key = jax.random.PRNGKey(0)
    k_params, k_x, k_x2 = jax.random.split(key, 3)

    obs_dim, act_dim = 16, 4  # small synthetic observation/action spaces
    params = init_params(k_params, obs_dim, act_dim)
    packed = pack_params(params, act_dim)
    elem_bf16 = _use_bf16_elementwise()

    for batch, kx in ((8, k_x), (40, k_x2)):   # 40 exercises the 2-step grid + row padding
        x = jax.random.normal(kx, (batch, obs_dim), jnp.float32)
        mean, log_std = jax.block_until_ready(
            actor_residual_forward(x, packed, act_dim, elem_bf16))
        assert mean.shape == (batch, act_dim) and log_std.shape == (batch, act_dim)

        # Exact-path check against a quantization-matched reference.
        ref_mean, ref_log_std = reference_forward(
            x, params, mxu_bf16=True, elem_bf16=elem_bf16)
        assert jnp.allclose(mean, ref_mean, atol=2e-2, rtol=2e-2)
        assert jnp.allclose(log_std, ref_log_std, atol=2e-2, rtol=2e-2)

        # Sanity check against the pure-f32 PyTorch-equivalent forward.
        # (Weights/activations are bf16 in the kernel, so outputs differ by ~1e-2 rel.)
        f32_mean, f32_log_std = reference_forward(
            x, params, mxu_bf16=False, elem_bf16=False)
        assert jnp.allclose(mean, f32_mean, atol=1e-1, rtol=1e-1)
        assert jnp.allclose(log_std, f32_log_std, atol=1e-1, rtol=1e-1)

        assert bool(jnp.all(log_std >= LOG_STD_MIN)) and bool(jnp.all(log_std <= LOG_STD_MAX))

    print("KERNEL_OK")
</pallas_src>

<mosaic_0001>
module attributes {stable_mosaic.version = 11 : i64} {
  func.func @actor_residual_kernel(%arg0: i32, %arg1: memref<8x16xf32, #tpu.memory_space<vmem>>, %arg2: memref<16x256xbf16, #tpu.memory_space<vmem>>, %arg3: memref<6x256x256xbf16, #tpu.memory_space<vmem>>, %arg4: memref<384x128xbf16, #tpu.memory_space<vmem>>, %arg5: memref<1x2176xf32, #tpu.memory_space<vmem>>, %arg6: memref<8x128xf32, #tpu.memory_space<vmem>>) attributes {dimension_semantics = [#tpu.dimension_semantics<parallel>], iteration_bounds = array<i64: 1>, scalar_prefetch = 0 : i64, scratch_operands = 0 : i64, tpu.core_type = #tpu.core_type<tc>, window_params = [{transform_indices = @transform_0, window_bounds = array<i64: 8, 16>}, {pipeline_mode = #tpu.pipeline_mode<synchronous>, transform_indices = @transform_1, window_bounds = array<i64: 16, 256>}, {pipeline_mode = #tpu.pipeline_mode<synchronous>, transform_indices = @transform_2, window_bounds = array<i64: 6, 256, 256>}, {pipeline_mode = #tpu.pipeline_mode<synchronous>, transform_indices = @transform_3, window_bounds = array<i64: 384, 128>}, {pipeline_mode = #tpu.pipeline_mode<synchronous>, transform_indices = @transform_4, window_bounds = array<i64: 1, 2176>}, {transform_indices = @transform_5, window_bounds = array<i64: 8, 128>}]} {
    %c0 = arith.constant 0 : index
    %c0_0 = arith.constant 0 : index
    %0 = vector.load %arg1[%c0, %c0_0] : memref<8x16xf32, #tpu.memory_space<vmem>>, vector<8x16xf32>
    %c0_1 = arith.constant 0 : index
    %c0_2 = arith.constant 0 : index
    %1 = vector.load %arg2[%c0_1, %c0_2] : memref<16x256xbf16, #tpu.memory_space<vmem>>, vector<16x256xbf16>
    %2 = arith.truncf %0 : vector<8x16xf32> to vector<8x16xbf16>
    %cst = arith.constant dense<0.000000e+00> : vector<8x256xf32>
    %3 = tpu.matmul %2, %1, %cst {dimension_numbers = #tpu.dot_dimension_numbers<[1], [0], [0], [1], [0, 0, 1, 1], [], []>} : vector<8x16xbf16>, vector<16x256xbf16>, vector<8x256xf32> -> vector<8x256xf32>
    %4 = arith.truncf %3 : vector<8x256xf32> to vector<8x256xbf16>
    %c0_3 = arith.constant 0 : index
    %c0_4 = arith.constant 0 : index
    %5 = vector.load %arg5[%c0_3, %c0_4] : memref<1x2176xf32, #tpu.memory_space<vmem>>, vector<1x256xf32>
    %6 = arith.truncf %5 : vector<1x256xf32> to vector<1x256xbf16>
    %7 = vector.broadcast %6 : vector<1x256xbf16> to vector<8x256xbf16>
    %8 = arith.addf %4, %7 : vector<8x256xbf16>
    %c0_5 = arith.constant 0 : index
    %c0_6 = arith.constant 0 : index
    %c0_7 = arith.constant 0 : index
    %9 = vector.load %arg3[%c0_5, %c0_6, %c0_7] : memref<6x256x256xbf16, #tpu.memory_space<vmem>>, vector<1x256x256xbf16>
    %10 = vector.shape_cast %9 : vector<1x256x256xbf16> to vector<256x256xbf16>
    %cst_8 = arith.constant dense<0.000000e+00> : vector<8x256xf32>
    %11 = tpu.matmul %8, %10, %cst_8 {dimension_numbers = #tpu.dot_dimension_numbers<[1], [0], [0], [1], [0, 0, 1, 1], [], []>} : vector<8x256xbf16>, vector<256x256xbf16>, vector<8x256xf32> -> vector<8x256xf32>
    %12 = arith.truncf %11 : vector<8x256xf32> to vector<8x256xbf16>
    %c0_9 = arith.constant 0 : index
    %c256 = arith.constant 256 : index
    %13 = vector.load %arg5[%c0_9, %c256] : memref<1x2176xf32, #tpu.memory_space<vmem>>, vector<1x256xf32>
    %14 = arith.truncf %13 : vector<1x256xf32> to vector<1x256xbf16>
    %15 = vector.broadcast %14 : vector<1x256xbf16> to vector<8x256xbf16>
    %16 = arith.addf %12, %15 : vector<8x256xbf16>
    %cst_10 = arith.constant 0.000000e+00 : bf16
    %17 = vector.broadcast %cst_10 : bf16 to vector<8x256xbf16>
    %18 = arith.maximumf %16, %17 : vector<8x256xbf16>
    %c1 = arith.constant 1 : index
    %c0_11 = arith.constant 0 : index
    %c0_12 = arith.constant 0 : index
    %19 = vector.load %arg3[%c1, %c0_11, %c0_12] : memref<6x256x256xbf16, #tpu.memory_space<vmem>>, vector<1x256x256xbf16>
    %20 = vector.shape_cast %19 : vector<1x256x256xbf16> to vector<256x256xbf16>
    %cst_13 = arith.constant dense<0.000000e+00> : vector<8x256xf32>
    %21 = tpu.matmul %18, %20, %cst_13 {dimension_numbers = #tpu.dot_dimension_numbers<[1], [0], [0], [1], [0, 0, 1, 1], [], []>} : vector<8x256xbf16>, vector<256x256xbf16>, vector<8x256xf32> -> vector<8x256xf32>
    %22 = arith.truncf %21 : vector<8x256xf32> to vector<8x256xbf16>
    %c0_14 = arith.constant 0 : index
    %c512 = arith.constant 512 : index
    %23 = vector.load %arg5[%c0_14, %c512] : memref<1x2176xf32, #tpu.memory_space<vmem>>, vector<1x256xf32>
    %24 = arith.truncf %23 : vector<1x256xf32> to vector<1x256xbf16>
    %25 = vector.broadcast %24 : vector<1x256xbf16> to vector<8x256xbf16>
    %26 = arith.addf %22, %25 : vector<8x256xbf16>
    %27 = arith.addf %26, %8 : vector<8x256xbf16>
    %cst_15 = arith.constant 0.000000e+00 : bf16
    %28 = vector.broadcast %cst_15 : bf16 to vector<8x256xbf16>
    %29 = arith.maximumf %27, %28 : vector<8x256xbf16>
    %c2 = arith.constant 2 : index
    %c0_16 = arith.constant 0 : index
    %c0_17 = arith.constant 0 : index
    %30 = vector.load %arg3[%c2, %c0_16, %c0_17] : memref<6x256x256xbf16, #tpu.memory_space<vmem>>, vector<1x256x256xbf16>
    %31 = vector.shape_cast %30 : vector<1x256x256xbf16> to vector<256x256xbf16>
    %cst_18 = arith.constant dense<0.000000e+00> : vector<8x256xf32>
    %32 = tpu.matmul %29, %31, %cst_18 {dimension_numbers = #tpu.dot_dimension_numbers<[1], [0], [0], [1], [0, 0, 1, 1], [], []>} : vector<8x256xbf16>, vector<256x256xbf16>, vector<8x256xf32> -> vector<8x256xf32>
    %33 = arith.truncf %32 : vector<8x256xf32> to vector<8x256xbf16>
    %c0_19 = arith.constant 0 : index
    %c768 = arith.constant 768 : index
    %34 = vector.load %arg5[%c0_19, %c768] : memref<1x2176xf32, #tpu.memory_space<vmem>>, vector<1x256xf32>
    %35 = arith.truncf %34 : vector<1x256xf32> to vector<1x256xbf16>
    %36 = vector.broadcast %35 : vector<1x256xbf16> to vector<8x256xbf16>
    %37 = arith.addf %33, %36 : vector<8x256xbf16>
    %cst_20 = arith.constant 0.000000e+00 : bf16
    %38 = vector.broadcast %cst_20 : bf16 to vector<8x256xbf16>
    %39 = arith.maximumf %37, %38 : vector<8x256xbf16>
    %c3 = arith.constant 3 : index
    %c0_21 = arith.constant 0 : index
    %c0_22 = arith.constant 0 : index
    %40 = vector.load %arg3[%c3, %c0_21, %c0_22] : memref<6x256x256xbf16, #tpu.memory_space<vmem>>, vector<1x256x256xbf16>
    %41 = vector.shape_cast %40 : vector<1x256x256xbf16> to vector<256x256xbf16>
    %cst_23 = arith.constant dense<0.000000e+00> : vector<8x256xf32>
    %42 = tpu.matmul %39, %41, %cst_23 {dimension_numbers = #tpu.dot_dimension_numbers<[1], [0], [0], [1], [0, 0, 1, 1], [], []>} : vector<8x256xbf16>, vector<256x256xbf16>, vector<8x256xf32> -> vector<8x256xf32>
    %43 = arith.truncf %42 : vector<8x256xf32> to vector<8x256xbf16>
    %c0_24 = arith.constant 0 : index
    %c1024 = arith.constant 1024 : index
    %44 = vector.load %arg5[%c0_24, %c1024] : memref<1x2176xf32, #tpu.memory_space<vmem>>, vector<1x256xf32>
    %45 = arith.truncf %44 : vector<1x256xf32> to vector<1x256xbf16>
    %46 = vector.broadcast %45 : vector<1x256xbf16> to vector<8x256xbf16>
    %47 = arith.addf %43, %46 : vector<8x256xbf16>
    %48 = arith.addf %47, %29 : vector<8x256xbf16>
    %cst_25 = arith.constant 0.000000e+00 : bf16
    %49 = vector.broadcast %cst_25 : bf16 to vector<8x256xbf16>
    %50 = arith.maximumf %48, %49 : vector<8x256xbf16>
    %c4 = arith.constant 4 : index
    %c0_26 = arith.constant 0 : index
    %c0_27 = arith.constant 0 : index
    %51 = vector.load %arg3[%c4, %c0_26, %c0_27] : memref<6x256x256xbf16, #tpu.memory_space<vmem>>, vector<1x256x256xbf16>
    %52 = vector.shape_cast %51 : vector<1x256x256xbf16> to vector<256x256xbf16>
    %cst_28 = arith.constant dense<0.000000e+00> : vector<8x256xf32>
    %53 = tpu.matmul %50, %52, %cst_28 {dimension_numbers = #tpu.dot_dimension_numbers<[1], [0], [0], [1], [0, 0, 1, 1], [], []>} : vector<8x256xbf16>, vector<256x256xbf16>, vector<8x256xf32> -> vector<8x256xf32>
    %54 = arith.truncf %53 : vector<8x256xf32> to vector<8x256xbf16>
    %c0_29 = arith.constant 0 : index
    %c1280 = arith.constant 1280 : index
    %55 = vector.load %arg5[%c0_29, %c1280] : memref<1x2176xf32, #tpu.memory_space<vmem>>, vector<1x256xf32>
    %56 = arith.truncf %55 : vector<1x256xf32> to vector<1x256xbf16>
    %57 = vector.broadcast %56 : vector<1x256xbf16> to vector<8x256xbf16>
    %58 = arith.addf %54, %57 : vector<8x256xbf16>
    %cst_30 = arith.constant 0.000000e+00 : bf16
    %59 = vector.broadcast %cst_30 : bf16 to vector<8x256xbf16>
    %60 = arith.maximumf %58, %59 : vector<8x256xbf16>
    %c5 = arith.constant 5 : index
    %c0_31 = arith.constant 0 : index
    %c0_32 = arith.constant 0 : index
    %61 = vector.load %arg3[%c5, %c0_31, %c0_32] : memref<6x256x256xbf16, #tpu.memory_space<vmem>>, vector<1x256x256xbf16>
    %62 = vector.shape_cast %61 : vector<1x256x256xbf16> to vector<256x256xbf16>
    %cst_33 = arith.constant dense<0.000000e+00> : vector<8x256xf32>
    %63 = tpu.matmul %60, %62, %cst_33 {dimension_numbers = #tpu.dot_dimension_numbers<[1], [0], [0], [1], [0, 0, 1, 1], [], []>} : vector<8x256xbf16>, vector<256x256xbf16>, vector<8x256xf32> -> vector<8x256xf32>
    %64 = arith.truncf %63 : vector<8x256xf32> to vector<8x256xbf16>
    %c0_34 = arith.constant 0 : index
    %c1536 = arith.constant 1536 : index
    %65 = vector.load %arg5[%c0_34, %c1536] : memref<1x2176xf32, #tpu.memory_space<vmem>>, vector<1x256xf32>
    %66 = arith.truncf %65 : vector<1x256xf32> to vector<1x256xbf16>
    %67 = vector.broadcast %66 : vector<1x256xbf16> to vector<8x256xbf16>
    %68 = arith.addf %64, %67 : vector<8x256xbf16>
    %69 = arith.addf %68, %50 : vector<8x256xbf16>
    %cst_35 = arith.constant 0.000000e+00 : bf16
    %70 = vector.broadcast %cst_35 : bf16 to vector<8x256xbf16>
    %71 = arith.maximumf %69, %70 : vector<8x256xbf16>
    %c0_36 = arith.constant 0 : index
    %c0_37 = arith.constant 0 : index
    %72 = vector.load %arg4[%c0_36, %c0_37] : memref<384x128xbf16, #tpu.memory_space<vmem>>, vector<256x128xbf16>
    %cst_38 = arith.constant dense<0.000000e+00> : vector<8x128xf32>
    %73 = tpu.matmul %71, %72, %cst_38 {dimension_numbers = #tpu.dot_dimension_numbers<[1], [0], [0], [1], [0, 0, 1, 1], [], []>} : vector<8x256xbf16>, vector<256x128xbf16>, vector<8x128xf32> -> vector<8x128xf32>
    %74 = arith.truncf %73 : vector<8x128xf32> to vector<8x128xbf16>
    %c0_39 = arith.constant 0 : index
    %c1792 = arith.constant 1792 : index
    %75 = vector.load %arg5[%c0_39, %c1792] : memref<1x2176xf32, #tpu.memory_space<vmem>>, vector<1x128xf32>
    %76 = arith.truncf %75 : vector<1x128xf32> to vector<1x128xbf16>
    %77 = vector.broadcast %76 : vector<1x128xbf16> to vector<8x128xbf16>
    %78 = arith.addf %74, %77 : vector<8x128xbf16>
    %cst_40 = arith.constant 0.000000e+00 : bf16
    %79 = vector.broadcast %cst_40 : bf16 to vector<8x128xbf16>
    %80 = arith.maximumf %78, %79 : vector<8x128xbf16>
    %c256_41 = arith.constant 256 : index
    %c0_42 = arith.constant 0 : index
    %81 = vector.load %arg4[%c256_41, %c0_42] : memref<384x128xbf16, #tpu.memory_space<vmem>>, vector<128x128xbf16>
    %cst_43 = arith.constant dense<0.000000e+00> : vector<8x128xf32>
    %82 = tpu.matmul %80, %81, %cst_43 {dimension_numbers = #tpu.dot_dimension_numbers<[1], [0], [0], [1], [0, 0, 1, 1], [], []>} : vector<8x128xbf16>, vector<128x128xbf16>, vector<8x128xf32> -> vector<8x128xf32>
    %c0_44 = arith.constant 0 : index
    %c1920 = arith.constant 1920 : index
    %83 = vector.load %arg5[%c0_44, %c1920] : memref<1x2176xf32, #tpu.memory_space<vmem>>, vector<1x128xf32>
    %84 = vector.broadcast %83 : vector<1x128xf32> to vector<8x128xf32>
    %85 = arith.addf %82, %84 : vector<8x128xf32>
    %c0_45 = arith.constant 0 : index
    %c2048 = arith.constant 2048 : index
    %86 = vector.load %arg5[%c0_45, %c2048] : memref<1x2176xf32, #tpu.memory_space<vmem>>, vector<1x128xf32>
    %87 = math.tanh %85 : vector<8x128xf32>
    %cst_46 = arith.constant 1.000000e+00 : f32
    %88 = vector.broadcast %cst_46 : f32 to vector<8x128xf32>
    %89 = arith.addf %87, %88 : vector<8x128xf32>
    %cst_47 = arith.constant 3.500000e+00 : f32
    %90 = vector.broadcast %cst_47 : f32 to vector<8x128xf32>
    %91 = arith.mulf %90, %89 : vector<8x128xf32>
    %cst_48 = arith.constant -5.000000e+00 : f32
    %92 = vector.broadcast %cst_48 : f32 to vector<8x128xf32>
    %93 = arith.addf %92, %91 : vector<8x128xf32>
    %94 = arith.subf %93, %85 : vector<8x128xf32>
    %95 = vector.broadcast %86 : vector<1x128xf32> to vector<8x128xf32>
    %96 = arith.mulf %95, %94 : vector<8x128xf32>
    %97 = arith.addf %85, %96 : vector<8x128xf32>
    %c0_49 = arith.constant 0 : index
    %c0_50 = arith.constant 0 : index
    %98 = vector.load %arg6[%c0_49, %c0_50] : memref<8x128xf32, #tpu.memory_space<vmem>>, vector<8x128xf32>
    tpu.vector_store %arg6[%c0_49, %c0_50], %97 {strides = array<i32>} : memref<8x128xf32, #tpu.memory_space<vmem>>, vector<8x128xf32>,
    return
  }
  func.func @transform_0(%arg0: i32) -> (i32, i32) {
    %c0_i32 = arith.constant 0 : i32
    %c0_i32_0 = arith.constant 0 : i32
    return %arg0, %c0_i32 : i32, i32
  }
  func.func @transform_1(%arg0: i32) -> (i32, i32) {
    %c0_i32 = arith.constant 0 : i32
    %c0_i32_0 = arith.constant 0 : i32
    %c0_i32_1 = arith.constant 0 : i32
    return %c0_i32, %c0_i32_0 : i32, i32
  }
  func.func @transform_2(%arg0: i32) -> (i32, i32, i32) {
    %c0_i32 = arith.constant 0 : i32
    %c0_i32_0 = arith.constant 0 : i32
    %c0_i32_1 = arith.constant 0 : i32
    %c0_i32_2 = arith.constant 0 : i32
    return %c0_i32, %c0_i32_0, %c0_i32_1 : i32, i32, i32
  }
  func.func @transform_3(%arg0: i32) -> (i32, i32) {
    %c0_i32 = arith.constant 0 : i32
    %c0_i32_0 = arith.constant 0 : i32
    %c0_i32_1 = arith.constant 0 : i32
    return %c0_i32, %c0_i32_0 : i32, i32
  }
  func.func @transform_4(%arg0: i32) -> (i32, i32) {
    %c0_i32 = arith.constant 0 : i32
    %c0_i32_0 = arith.constant 0 : i32
    %c0_i32_1 = arith.constant 0 : i32
    return %c0_i32, %c0_i32_0 : i32, i32
  }
  func.func @transform_5(%arg0: i32) -> (i32, i32) {
    %c0_i32 = arith.constant 0 : i32
    %c0_i32_0 = arith.constant 0 : i32
    return %arg0, %c0_i32 : i32, i32
  }
}

</mosaic_0001>

<bundles_post_ra>
// kernel: actor_residual_forward.1
= control target key start
LH: loop header
LB: loop body
LE: loop exit
PB: predicated region body
PF: predicated region fallthrough
CT: control target
= control target key end

     0   :  { %10 = vsyncpa [#allocation3], 0  ;;  %s2946_s0 = inlined_call_operand.hbm [shape: f32[8,16], index: 0, kind: input, shape index: {}]   ;;  %s2947_s1 = inlined_call_operand.hbm [shape: bf16[16,256], index: 1, kind: input, shape index: {}]   ;;  %s2948_s2 = inlined_call_operand.hbm [shape: bf16[6,256,256], index: 2, kind: input, shape index: {}]   ;;  %s2949_s3 = inlined_call_operand.hbm [shape: bf16[384,128], index: 3, kind: input, shape index: {}]   ;;  %s2950_s4 = inlined_call_operand.hbm [shape: f32[1,2176], index: 4, kind: input, shape index: {}]   ;;  %s2951_s5 = inlined_call_operand.vmem [shape: f32[8,128], index: 5, kind: output, shape index: {}]  }
   0x1   :  { %11 = vsyncpa [#allocation5], 0 }
   0x2   :  { %12 = vsyncpa [#allocation8], 0  ;;  %s2809_s18 = smov [#allocation4]  }
   0x3   :  { %s28_s19 = sshll.u32 %s2809_s18, 4  ;;  %s29_s19 = int_to_ptr.vmem [resolvable:$true] %s28_s19 }
   0x4   :  { %s2711_s20 = scalar_lea.vmem %s29_s19, 256  ;;  %p2716_p1 = scmp.lt.s32.totalorder %s29_s19, %s29_s19 }
   0x5   :  { %p2712_p0 = scmp.ne.s32.totalorder %s29_s19, %s2711_s20  ;;  %p2717_p2 = scmp.lt.s32.totalorder %s2711_s20, %s2711_s20 }
   0x7   :  { %p2718_p3 = por %p2717_p2, %p2716_p1 }
   0x9   :  { %p2719_p4 = pnand %p2718_p3, %p2712_p0 }
   0xb   :  { %2722 = shalt.err (!%p2719_p4)
}
   0xc   :  { %s2810_s21 = smov 128   ;;  %s2811_s22 = smov 8  }
   0xd   :  { %34 = dma.hbm_to_vmem [thread:$0]  %s2947_s1, 256, %s29_s19, [#allocation5], %s2810_s21, %s2810_s21, %s2811_s22  }
   0xe   :  { %s2812_s25 = smov [#allocation7]  }
   0xf   :  { %s52_s26 = sshll.u32 %s2812_s25, 4  ;;  %s53_s26 = int_to_ptr.vmem [resolvable:$true] %s52_s26 }
  0x10   :  { %s2731_s27 = scalar_lea.vmem %s53_s26, 3072  ;;  %p2736_p6 = scmp.lt.s32.totalorder %s53_s26, %s53_s26 }
  0x11   :  { %p2732_p5 = scmp.ne.s32.totalorder %s53_s26, %s2731_s27  ;;  %p2737_p7 = scmp.lt.s32.totalorder %s2731_s27, %s2731_s27 }
  0x13   :  { %p2738_p8 = por %p2737_p7, %p2736_p6 }
  0x15   :  { %p2739_p9 = pnand %p2738_p8, %p2732_p5 }
  0x17   :  { %2742 = shalt.err (!%p2739_p9)
}
  0x18   :  { %s2813_s28 = smov 64   ;;  %s2814_s29 = smov 4  }
  0x19   :  { %58 = dma.hbm_to_vmem [thread:$0]  %s2949_s3, 3072, %s53_s26, [#allocation8], %s2813_s28, %s2813_s28, %s2814_s29  }
  0x1a   :  { %s2815_s7 = smov [#allocation2]   ;;  %s2816_s9 = smov [#allocation6]  }
  0x1b   :  { %s19_s8 = sshll.u32 %s2815_s7, 4  ;;  %s40_s1 = sshll.u32 %s2816_s9, 4  ;;  %s20_s8 = int_to_ptr.vmem [resolvable:$true] %s19_s8  ;;  %s41_s1 = int_to_ptr.vmem [resolvable:$true] %s40_s1 }
  0x1c   :  { %s2751_s10 = scalar_lea.vmem %s20_s8, 128  ;;  %p2756_p11 = scmp.lt.s32.totalorder %s20_s8, %s20_s8 }
  0x1d   :  { %p2752_p10 = scmp.ne.s32.totalorder %s20_s8, %s2751_s10  ;;  %p2757_p12 = scmp.lt.s32.totalorder %s2751_s10, %s2751_s10 }
  0x1f   :  { %p2758_p13 = por %p2757_p12, %p2756_p11 }
  0x21   :  { %p2759_p0 = pnand %p2758_p13, %p2752_p10 }
  0x23   :  { %2762 = shalt.err (!%p2759_p0)
}
  0x24   :  { %22 = dma.hbm_to_vmem [thread:$0]  %s2946_s0, 128, %s20_s8, [#allocation3]  }
  0x25   :  { %s2771_s13 = scalar_lea.vmem %s41_s1, 24576  ;;  %p2776_p2 = scmp.lt.s32.totalorder %s41_s1, %s41_s1 }
  0x26   :  { %p2772_p1 = scmp.ne.s32.totalorder %s41_s1, %s2771_s13  ;;  %p2777_p3 = scmp.lt.s32.totalorder %s2771_s13, %s2771_s13 }
  0x28   :  { %p2778_p4 = por %p2777_p3, %p2776_p2 }
  0x2a   :  { %p2779_p5 = pnand %p2778_p4, %p2772_p1 }
  0x2c   :  { %2782 = shalt.err (!%p2779_p5)
}
  0x2d   :  { %46 = dma.hbm_to_vmem [thread:$0]  %s2948_s2, 24576, %s41_s1, [#allocation5], %s2810_s21, %s2810_s21, %s2811_s22  }
  0x2e   :  { %s2817_s15 = smov [#allocation9]  }
  0x2f   :  { %s65_s16 = sshll.u32 %s2817_s15, 4  ;;  %s66_s16 = int_to_ptr.vmem [resolvable:$true] %s65_s16 }
  0x30   :  { %s2791_s17 = scalar_lea.vmem %s66_s16, 272  ;;  %s2795_s0 = scalar_lea.vmem %s66_s16, 288 }
  0x31   :  { %p2792_p6 = scmp.ne.s32.totalorder %s66_s16, %s2791_s17  ;;  %p2796_p7 = scmp.lt.s32.totalorder %s66_s16, %s66_s16 }
  0x32   :  { %p2797_p8 = scmp.lt.s32.totalorder %s2795_s0, %s2791_s17 }
  0x34   :  { %p2798_p9 = por %p2797_p8, %p2796_p7 }
  0x36   :  { %p2799_p10 = pnand %p2798_p9, %p2792_p6 }
  0x38   :  { %2802 = shalt.err (!%p2799_p10)
}
  0x39   :  { %68 = dma.hbm_to_vmem [thread:$0]  %s2950_s4, 272, %s66_s16, [#allocation8]  }
  0x3a   :  { %2803 = dma.done.wait [#allocation3], 128  }
  0x3b   :  { %2804 = vsyncadd [#allocation3], 4294967168 }
  0x3c   :  { %2805 = dma.done.wait [#allocation5], 24832  }
  0x3d   :  { %2806 = vsyncadd [#allocation5], 4294942464 }
  0x3e   :  { %2807 = dma.done.wait [#allocation8], 3344  }
  0x3f   :  { %2808 = vsyncadd [#allocation8], 4294963952  ;;  %v2818_v0 = vmov 0   ;;  %v2386_v1 = vld [vmem:[#allocation4 + $0x4] ss:$8 sps:$4 sm:$0xff]   ;;  %v85_v3 = vld [vmem:[#allocation2] sm:$0xff] }
  0x40   :  { %135 = vmatprep.mubr.bf16.mxu0 %v2818_v0  ;;  %v2388_v2 = vld [vmem:[#allocation4] ss:$8 sps:$4 sm:$0xff]   ;;  %117 = vmatprep.subr.bf16.mxu0 %v2386_v1  ;;  %v88_v4 = vpack.c.bf16 %v85_v3, %v85_v3  ;;  %v2389_v5 = vld [vmem:[#allocation6 + $0x74] ss:$8 sps:$4 sm:$0xff]   ;;  %vm99_vm0 = vcmask 130048   ;;  %vm2820_vm1 = vmmov 0  }
  0x41   :  { %v2391_v6 = vld [vmem:[#allocation6 + $0x70] ss:$8 sps:$4 sm:$0xff]   ;;  %118 = vmatpush1.bf16.msra.mxu0 %v2388_v2  ;;  %v2392_v7 = vld [vmem:[#allocation6 + $0x64] ss:$8 sps:$4 sm:$0xff]   ;;  %368 = vmatprep.subr.bf16.mxu1 %v2389_v5  ;;  %v2394_v8 = vld [vmem:[#allocation6 + $0x60] ss:$8 sps:$4 sm:$0xff]   ;;  %v148_v2 = vlaneseq }
  0x42   :  { %369 = vmatpush1.bf16.msra.mxu1 %v2391_v6  ;;  %v2395_v9 = vld [vmem:[#allocation6 + $0x54] ss:$8 sps:$4 sm:$0xff]   ;;  %v2397_v10 = vld [vmem:[#allocation6 + $0x50] ss:$8 sps:$4 sm:$0xff]   ;;  %v2398_v11 = vld [vmem:[#allocation6 + $0x44] ss:$8 sps:$4 sm:$0xff]  }
  0x43   :  { %370 = vmatprep.subr.bf16.mxu1 %v2392_v7  ;;  %v2400_v12 = vld [vmem:[#allocation6 + $0x40] ss:$8 sps:$4 sm:$0xff]   ;;  %v2401_v13 = vld [vmem:[#allocation6 + $0x34] ss:$8 sps:$4 sm:$0xff]   ;;  %v2403_v14 = vld [vmem:[#allocation6 + $0x30] ss:$8 sps:$4 sm:$0xff]  }
  0x44   :  { %2104 = vmatmul.mubr.msk.bf16.vlgmr.msra.gmra.mxu0 %vm99_vm0, %v88_v4  ;;  %v2404_v15 = vld [vmem:[#allocation6 + $0x24] ss:$8 sps:$4 sm:$0xff]   ;;  %v2406_v16 = vld [vmem:[#allocation6 + $0x20] ss:$8 sps:$4 sm:$0xff]   ;;  %v2407_v17 = vld [vmem:[#allocation6 + $0x14] ss:$8 sps:$4 sm:$0xff]  }
  0x45   :  { %v2409_v18 = vld [vmem:[#allocation6 + $0x10] ss:$8 sps:$4 sm:$0xff]   ;;  %v2410_v19 = vld [vmem:[#allocation6 + $0x4] ss:$8 sps:$4 sm:$0xff]   ;;  %v2412_v20 = vld [vmem:[#allocation6] ss:$8 sps:$4 sm:$0xff]  }
  0x46   :  { %371 = vmatpush1.bf16.msra.mxu1 %v2394_v8  ;;  %v2413_v21 = vld [vmem:[#allocation6 + $0xf4] ss:$8 sps:$4 sm:$0xff]   ;;  %v2415_v22 = vld [vmem:[#allocation6 + $0xf0] ss:$8 sps:$4 sm:$0xff]   ;;  %v2416_v23 = vld [vmem:[#allocation6 + $0xe4] ss:$8 sps:$4 sm:$0xff]  }
  0x47   :  { %372 = vmatprep.subr.bf16.mxu1 %v2395_v9  ;;  %v2418_v24 = vld [vmem:[#allocation6 + $0xe0] ss:$8 sps:$4 sm:$0xff]   ;;  %v2419_v25 = vld [vmem:[#allocation6 + $0xd4] ss:$8 sps:$4 sm:$0xff]   ;;  %v2421_v26 = vld [vmem:[#allocation6 + $0xd0] ss:$8 sps:$4 sm:$0xff]  }
  0x48   :  { %v2422_v27 = vld [vmem:[#allocation6 + $0xc4] ss:$8 sps:$4 sm:$0xff]   ;;  %v2424_v28 = vld [vmem:[#allocation6 + $0xc0] ss:$8 sps:$4 sm:$0xff]   ;;  %v2425_v29 = vld [vmem:[#allocation6 + $0xb4] ss:$8 sps:$4 sm:$0xff]  }
  0x49   :  { %v2427_v30 = vld [vmem:[#allocation6 + $0xb0] ss:$8 sps:$4 sm:$0xff]   ;;  %v2428_v31 = vld [vmem:[#allocation6 + $0xa4] ss:$8 sps:$4 sm:$0xff]   ;;  %v2430_v32 = vld [vmem:[#allocation6 + $0xa0] ss:$8 sps:$4 sm:$0xff]  }
  0x4a   :  { %373 = vmatpush1.bf16.msra.mxu1 %v2397_v10  ;;  %v2431_v33 = vld [vmem:[#allocation6 + $0x94] ss:$8 sps:$4 sm:$0xff]   ;;  %v2433_v34 = vld [vmem:[#allocation6 + $0x90] ss:$8 sps:$4 sm:$0xff]   ;;  %v2434_v35 = vld [vmem:[#allocation6 + $0x84] ss:$8 sps:$4 sm:$0xff]  }
  0x4b   :  { %374 = vmatprep.subr.bf16.mxu1 %v2398_v11  ;;  %v2436_v36 = vld [vmem:[#allocation6 + $0x80] ss:$8 sps:$4 sm:$0xff]   ;;  %v2437_v37 = vld [vmem:[#allocation6 + $0x170] ss:$8 sps:$4 sm:$0xff]   ;;  %v2439_v38 = vld [vmem:[#allocation6 + $0x174] ss:$8 sps:$4 sm:$0xff]  }
  0x4c   :  { %v2442_v39 = vld [vmem:[#allocation6 + $0x164] ss:$8 sps:$4 sm:$0xff]   ;;  %636 = vmatprep.subr.bf16.mxu0 %v2439_v38  ;;  %v2440_v40 = vld [vmem:[#allocation6 + $0x160] ss:$8 sps:$4 sm:$0xff]   ;;  %v2445_v41 = vld [vmem:[#allocation6 + $0x154] ss:$8 sps:$4 sm:$0xff]  }
  0x4d   :  { %637 = vmatpush1.bf16.msra.mxu0 %v2437_v37  ;;  %v2443_v42 = vld [vmem:[#allocation6 + $0x150] ss:$8 sps:$4 sm:$0xff]   ;;  %v2448_v43 = vld [vmem:[#allocation6 + $0x144] ss:$8 sps:$4 sm:$0xff]   ;;  %v2446_v44 = vld [vmem:[#allocation6 + $0x140] ss:$8 sps:$4 sm:$0xff]  }
  0x4e   :  { %375 = vmatpush1.bf16.msra.mxu1 %v2400_v12  ;;  %638 = vmatprep.subr.bf16.mxu0 %v2442_v39  ;;  %v2451_v45 = vld [vmem:[#allocation6 + $0x134] ss:$8 sps:$4 sm:$0xff]   ;;  %v2449_v46 = vld [vmem:[#allocation6 + $0x130] ss:$8 sps:$4 sm:$0xff]   ;;  %v2454_v47 = vld [vmem:[#allocation6 + $0x124] ss:$8 sps:$4 sm:$0xff]  }
  0x4f   :  { %376 = vmatprep.subr.bf16.mxu1 %v2401_v13  ;;  %v2452_v48 = vld [vmem:[#allocation6 + $0x120] ss:$8 sps:$4 sm:$0xff]   ;;  %v2457_v49 = vld [vmem:[#allocation6 + $0x114] ss:$8 sps:$4 sm:$0xff]   ;;  %v2455_v50 = vld [vmem:[#allocation6 + $0x110] ss:$8 sps:$4 sm:$0xff]  }
  0x50   :  { %v2460_v51 = vld [vmem:[#allocation6 + $0x104] ss:$8 sps:$4 sm:$0xff]   ;;  %v2458_v52 = vld [vmem:[#allocation6 + $0x100] ss:$8 sps:$4 sm:$0xff]   ;;  %v2463_v53 = vld [vmem:[#allocation6 + $0x1f4] ss:$8 sps:$4 sm:$0xff]  }
  0x51   :  { %639 = vmatpush1.bf16.msra.mxu0 %v2440_v40  ;;  %v2461_v54 = vld [vmem:[#allocation6 + $0x1f0] ss:$8 sps:$4 sm:$0xff]   ;;  %v2466_v55 = vld [vmem:[#allocation6 + $0x1e4] ss:$8 sps:$4 sm:$0xff]   ;;  %v2464_v56 = vld [vmem:[#allocation6 + $0x1e0] ss:$8 sps:$4 sm:$0xff]  }
  0x52   :  { %377 = vmatpush1.bf16.msra.mxu1 %v2403_v14  ;;  %640 = vmatprep.subr.bf16.mxu0 %v2445_v41  ;;  %v2469_v57 = vld [vmem:[#allocation6 + $0x1d4] ss:$8 sps:$4 sm:$0xff]   ;;  %v2467_v58 = vld [vmem:[#allocation6 + $0x1d0] ss:$8 sps:$4 sm:$0xff]   ;;  %v2472_v59 = vld [vmem:[#allocation6 + $0x1c4] ss:$8 sps:$4 sm:$0xff]  }
  0x53   :  { %378 = vmatprep.subr.bf16.mxu1 %v2404_v15  ;;  %v2470_v60 = vld [vmem:[#allocation6 + $0x1c0] ss:$8 sps:$4 sm:$0xff]   ;;  %v2475_v61 = vld [vmem:[#allocation6 + $0x1b4] ss:$8 sps:$4 sm:$0xff]   ;;  %v2473_v62 = vld [vmem:[#allocation6 + $0x1b0] ss:$8 sps:$4 sm:$0xff]  }
  0x54   :  { %v2478_v63 = vld [vmem:[#allocation6 + $0x1a4] ss:$8 sps:$4 sm:$0xff]   ;;  %v2476_v1 = vld [vmem:[#allocation6 + $0x1a0] ss:$8 sps:$4 sm:$0xff]   ;;  %v149_v3 = vshrl.u32 %v148_v2, 7 }
  0x55   :  { %641 = vmatpush1.bf16.msra.mxu0 %v2443_v42  ;;  %v146_v6 = vld [vmem:[#allocation9] sm:$0x3]  ;;  %v2502_v37 = vld [vmem:[#allocation6 + $0x224] ss:$8 sps:$4 sm:$0xff]   ;;  %v2505_v39 = vld [vmem:[#allocation6 + $0x214] ss:$8 sps:$4 sm:$0xff]  }
  0x56   :  { %379 = vmatpush1.bf16.msra.mxu1 %v2406_v16  ;;  %642 = vmatprep.subr.bf16.mxu0 %v2448_v43  ;;  %v2873_v4 = vsub.s32 1, %v149_v3  ;;  %v2875_v5 = vsub.s32 0, %v149_v3  ;;  %v2500_v38 = vld [vmem:[#allocation6 + $0x220] ss:$8 sps:$4 sm:$0xff]   ;;  %v2503_v40 = vld [vmem:[#allocation6 + $0x210] ss:$8 sps:$4 sm:$0xff]  }
  0x57   :  { %380 = vmatprep.subr.bf16.mxu1 %v2407_v17  ;;  %v2508_v41 = vld [vmem:[#allocation6 + $0x204] ss:$8 sps:$4 sm:$0xff]   ;;  %v2506_v42 = vld [vmem:[#allocation6 + $0x200] ss:$8 sps:$4 sm:$0xff]   ;;  %v2511_v43 = vld [vmem:[#allocation6 + $0x2f4] ss:$8 sps:$4 sm:$0xff]  }
  0x58   :  { %v155_v7 = vrot.slane %v146_v6, %v2873_v4  ;;  %v151_v8 = vrot.slane %v146_v6, %v2875_v5 }
  0x59   :  { %643 = vmatpush1.bf16.msra.mxu0 %v2446_v44  ;;  %v2509_v44 = vld [vmem:[#allocation6 + $0x2f0] ss:$8 sps:$4 sm:$0xff]  }
  0x5a   :  { %381 = vmatpush1.bf16.msra.mxu1 %v2409_v18  ;;  %644 = vmatprep.subr.bf16.mxu0 %v2451_v45  ;;  %v159_v9 = vpack.c.bf16 %v155_v7, %v155_v7  ;;  %v158_v10 = vpack.c.bf16 %v151_v8, %v151_v8  ;;  %v2514_v45 = vld [vmem:[#allocation6 + $0x2e4] ss:$8 sps:$4 sm:$0xff]  }
  0x5b   :  { %382 = vmatprep.subr.bf16.mxu1 %v2410_v19 }
  0x5c   :  { %v168_v11 = vpack.i.b16 %v159_v9, %v159_v9  ;;  %v161_v12 = vpack.i.b16 %v158_v10, %v158_v10 }
  0x5d   :  { %645 = vmatpush1.bf16.msra.mxu0 %v2449_v46  ;;  %v2512_v46 = vld [vmem:[#allocation6 + $0x2e0] ss:$8 sps:$4 sm:$0xff]  }
  0x5e   :  { %383 = vmatpush1.bf16.msra.mxu1 %v2412_v20  ;;  %646 = vmatprep.subr.bf16.mxu0 %v2454_v47  ;;  %v173_v14 = vrot.slane %v168_v11, %v2875_v5  ;;  %v166_v16 = vrot.slane %v161_v12, %v2875_v5  ;;  %v2517_v47 = vld [vmem:[#allocation6 + $0x2d4] ss:$8 sps:$4 sm:$0xff]   ;;  %v2526_v11 = vld [vmem:[#allocation6 + $0x2a4] ss:$8 sps:$4 sm:$0xff]   ;;  %v2524_v12 = vld [vmem:[#allocation6 + $0x2a0] ss:$8 sps:$4 sm:$0xff]  }
  0x5f   :  { %384 = vmatprep.subr.bf16.mxu1 %v2413_v21 }
  0x61   :  { %647 = vmatpush1.bf16.msra.mxu0 %v2452_v48  ;;  %v2515_v48 = vld [vmem:[#allocation6 + $0x2d0] ss:$8 sps:$4 sm:$0xff]  }
  0x62   :  { %385 = vmatpush2.bf16.msra.mxu1 %v2415_v22  ;;  %648 = vmatprep.subr.bf16.mxu0 %v2457_v49  ;;  %v2520_v49 = vld [vmem:[#allocation6 + $0x2c4] ss:$8 sps:$4 sm:$0xff]  }
  0x63   :  { %386 = vmatprep.subr.bf16.mxu1 %v2416_v23  ;;  %v2481_v23 = vld [vmem:[#allocation6 + $0x194] ss:$8 sps:$4 sm:$0xff]  }
  0x65   :  { %649 = vmatpush1.bf16.msra.mxu0 %v2455_v50  ;;  %v2518_v50 = vld [vmem:[#allocation6 + $0x2c0] ss:$8 sps:$4 sm:$0xff]  }
  0x66   :  { %387 = vmatpush2.bf16.msra.mxu1 %v2418_v24  ;;  %650 = vmatprep.subr.bf16.mxu0 %v2460_v51  ;;  %v2479_v24 = vld [vmem:[#allocation6 + $0x190] ss:$8 sps:$4 sm:$0xff]   ;;  %v2523_v51 = vld [vmem:[#allocation6 + $0x2b4] ss:$8 sps:$4 sm:$0xff]  }
  0x67   :  { %388 = vmatprep.subr.bf16.mxu1 %v2419_v25  ;;  %v2484_v25 = vld [vmem:[#allocation6 + $0x184] ss:$8 sps:$4 sm:$0xff]  }
  0x69   :  { %651 = vmatpush1.bf16.msra.mxu0 %v2458_v52  ;;  %v2521_v52 = vld [vmem:[#allocation6 + $0x2b0] ss:$8 sps:$4 sm:$0xff]  }
  0x6a   :  { %389 = vmatpush2.bf16.msra.mxu1 %v2421_v26  ;;  %652 = vmatprep.subr.bf16.mxu0 %v2463_v53  ;;  %v2482_v26 = vld [vmem:[#allocation6 + $0x180] ss:$8 sps:$4 sm:$0xff]  }
  0x6b   :  { %390 = vmatprep.subr.bf16.mxu1 %v2422_v27  ;;  %v2485_v27 = vld [vmem:[#allocation6 + $0x270] ss:$8 sps:$4 sm:$0xff]   ;;  %v411_v53 = vld [vmem:[#allocation9 + $0x2] sm:$0x3] }
  0x6d   :  { %653 = vmatpush2.bf16.msra.mxu0 %v2461_v54  ;;  %v416_v54 = vrot.slane %v411_v53, %v2875_v5 }
  0x6e   :  { %391 = vmatpush2.bf16.msra.mxu1 %v2424_v28  ;;  %654 = vmatprep.subr.bf16.mxu0 %v2466_v55  ;;  %v2487_v28 = vld [vmem:[#allocation6 + $0x274] ss:$8 sps:$4 sm:$0xff]   ;;  %v420_v55 = vrot.slane %v411_v53, %v2873_v4 }
  0x6f   :  { %392 = vmatprep.subr.bf16.mxu1 %v2425_v29  ;;  %v2490_v29 = vld [vmem:[#allocation6 + $0x264] ss:$8 sps:$4 sm:$0xff]  }
  0x71   :  { %655 = vmatpush2.bf16.msra.mxu0 %v2464_v56  ;;  %v423_v56 = vpack.c.bf16 %v416_v54, %v416_v54 }
  0x72   :  { %393 = vmatpush2.bf16.msra.mxu1 %v2427_v30  ;;  %656 = vmatprep.subr.bf16.mxu0 %v2469_v57  ;;  %v2488_v30 = vld [vmem:[#allocation6 + $0x260] ss:$8 sps:$4 sm:$0xff]   ;;  %v424_v57 = vpack.c.bf16 %v420_v55, %v420_v55 }
  0x73   :  { %394 = vmatprep.subr.bf16.mxu1 %v2428_v31  ;;  %v2493_v31 = vld [vmem:[#allocation6 + $0x254] ss:$8 sps:$4 sm:$0xff]  }
  0x75   :  { %657 = vmatpush2.bf16.msra.mxu0 %v2467_v58  ;;  %v426_v58 = vpack.i.b16 %v423_v56, %v423_v56 }
  0x76   :  { %395 = vmatpush2.bf16.msra.mxu1 %v2430_v32  ;;  %658 = vmatprep.subr.bf16.mxu0 %v2472_v59  ;;  %v2491_v32 = vld [vmem:[#allocation6 + $0x250] ss:$8 sps:$4 sm:$0xff]   ;;  %v433_v59 = vpack.i.b16 %v424_v57, %v424_v57 }
  0x77   :  { %396 = vmatprep.subr.bf16.mxu1 %v2431_v33  ;;  %v2496_v33 = vld [vmem:[#allocation6 + $0x244] ss:$8 sps:$4 sm:$0xff]  }
  0x79   :  { %659 = vmatpush2.bf16.msra.mxu0 %v2470_v60 }
  0x7a   :  { %397 = vmatpush2.bf16.msra.mxu1 %v2433_v34  ;;  %660 = vmatprep.subr.bf16.mxu0 %v2475_v61  ;;  %v2494_v34 = vld [vmem:[#allocation6 + $0x240] ss:$8 sps:$4 sm:$0xff]   ;;  %v431_v61 = vrot.slane %v426_v58, %v2875_v5 }
  0x7b   :  { %398 = vmatprep.subr.bf16.mxu1 %v2434_v35  ;;  %v2499_v35 = vld [vmem:[#allocation6 + $0x234] ss:$8 sps:$4 sm:$0xff]  }
  0x7d   :  { %661 = vmatpush2.bf16.msra.mxu0 %v2473_v62 }
  0x7e   :  { %399 = vmatpush2.bf16.msra.mxu1 %v2436_v36  ;;  %662 = vmatprep.subr.bf16.mxu0 %v2478_v63  ;;  %v2497_v36 = vld [vmem:[#allocation6 + $0x230] ss:$8 sps:$4 sm:$0xff]   ;;  %v438_v63 = vrot.slane %v433_v59, %v2875_v5 }
  0x7f   :  { %906 = vmatprep.subr.bf16.mxu1 %v2487_v28  ;;  %v2545_v28 = vld [vmem:[#allocation6 + $0x330] ss:$8 sps:$4 sm:$0xff]  }
  0x81   :  { %663 = vmatpush2.bf16.msra.mxu0 %v2476_v1 }
  0x82   :  { %664 = vmatprep.subr.bf16.mxu0 %v2481_v23  ;;  %v2541_v23 = vld [vmem:[#allocation6 + $0x354] ss:$8 sps:$4 sm:$0xff]  }
  0x85   :  { %665 = vmatpush2.bf16.msra.mxu0 %v2479_v24  ;;  %v2539_v24 = vld [vmem:[#allocation6 + $0x350] ss:$8 sps:$4 sm:$0xff]  }
  0x86   :  { %666 = vmatprep.subr.bf16.mxu0 %v2484_v25  ;;  %v2544_v25 = vld [vmem:[#allocation6 + $0x344] ss:$8 sps:$4 sm:$0xff]  }
  0x89   :  { %667 = vmatpush2.bf16.msra.mxu0 %v2482_v26  ;;  %v2542_v26 = vld [vmem:[#allocation6 + $0x340] ss:$8 sps:$4 sm:$0xff]  }
 0x104   :  { %v137_v13 = vpop.f32.mrf.mxu0 }
 0x105   :  { %v144_v15 = vpack.c.bf16 %v137_v13, %v137_v13  ;;  %v2529_v13 = vld [vmem:[#allocation6 + $0x294] ss:$8 sps:$4 sm:$0xff]  }
 0x106   :  { %v139_v17 = vpop.f32.mrf.mxu0 }
 0x107   :  { %v145_v18 = vpack.c.bf16 %v139_v17, %v139_v17  ;;  %v2883_v21 = vadd.bf16 %v166_v16, %v144_v15  ;;  %v2532_v15 = vld [vmem:[#allocation6 + $0x284] ss:$8 sps:$4 sm:$0xff]   ;;  %v2530_v16 = vld [vmem:[#allocation6 + $0x280] ss:$8 sps:$4 sm:$0xff]   ;;  %v2533_v17 = vld [vmem:[#allocation6 + $0x370] ss:$8 sps:$4 sm:$0xff]  }
 0x108   :  { %v141_v19 = vpop.f32.mrf.mxu0 }
 0x109   :  { %v2881_v20 = vadd.bf16 %v173_v14, %v145_v18  ;;  %v2527_v14 = vld [vmem:[#allocation6 + $0x290] ss:$8 sps:$4 sm:$0xff]   ;;  %v2535_v18 = vld [vmem:[#allocation6 + $0x374] ss:$8 sps:$4 sm:$0xff]   ;;  %v2538_v19 = vld [vmem:[#allocation6 + $0x364] ss:$8 sps:$4 sm:$0xff]  }
 0x10a   :  { %v142_v22 = vpop.f32.mrf.mxu0  ;;  %1174 = vmatprep.subr.bf16.mxu0 %v2535_v18  ;;  %v2593_v18 = vld [vmem:[#allocation6 + $0x430] ss:$8 sps:$4 sm:$0xff]  }
 0x10b   :  { %400 = vmatprep.mubr.bf16.mxu1 %v2881_v20  ;;  %v2536_v22 = vld [vmem:[#allocation6 + $0x360] ss:$8 sps:$4 sm:$0xff]  }
 0x10c   :  { %401 = vmatmul.mubr.bf16.vlgmr.msra.gmra.mxu1 %v2883_v21 }
 0x10d   :  { %907 = vmatpush1.bf16.msra.mxu1 %v2485_v27  ;;  %v2547_v27 = vld [vmem:[#allocation6 + $0x334] ss:$8 sps:$4 sm:$0xff]  }
 0x10e   :  { %908 = vmatprep.subr.bf16.mxu1 %v2490_v29  ;;  %v2550_v29 = vld [vmem:[#allocation6 + $0x324] ss:$8 sps:$4 sm:$0xff]  }
 0x111   :  { %909 = vmatpush1.bf16.msra.mxu1 %v2488_v30  ;;  %v2548_v30 = vld [vmem:[#allocation6 + $0x320] ss:$8 sps:$4 sm:$0xff]  }
 0x112   :  { %910 = vmatprep.subr.bf16.mxu1 %v2493_v31  ;;  %v2553_v31 = vld [vmem:[#allocation6 + $0x314] ss:$8 sps:$4 sm:$0xff]  }
 0x115   :  { %911 = vmatpush1.bf16.msra.mxu1 %v2491_v32  ;;  %v2551_v32 = vld [vmem:[#allocation6 + $0x310] ss:$8 sps:$4 sm:$0xff]  }
 0x116   :  { %912 = vmatprep.subr.bf16.mxu1 %v2496_v33  ;;  %v2556_v33 = vld [vmem:[#allocation6 + $0x304] ss:$8 sps:$4 sm:$0xff]  }
 0x119   :  { %913 = vmatpush1.bf16.msra.mxu1 %v2494_v34  ;;  %v2554_v34 = vld [vmem:[#allocation6 + $0x300] ss:$8 sps:$4 sm:$0xff]  }
 0x11a   :  { %914 = vmatprep.subr.bf16.mxu1 %v2499_v35  ;;  %v2559_v35 = vld [vmem:[#allocation6 + $0x3f4] ss:$8 sps:$4 sm:$0xff]  }
 0x11d   :  { %915 = vmatpush1.bf16.msra.mxu1 %v2497_v36  ;;  %v2557_v36 = vld [vmem:[#allocation6 + $0x3f0] ss:$8 sps:$4 sm:$0xff]  }
 0x11e   :  { %916 = vmatprep.subr.bf16.mxu1 %v2502_v37  ;;  %v2562_v37 = vld [vmem:[#allocation6 + $0x3e4] ss:$8 sps:$4 sm:$0xff]  }
 0x121   :  { %917 = vmatpush1.bf16.msra.mxu1 %v2500_v38  ;;  %v2560_v38 = vld [vmem:[#allocation6 + $0x3e0] ss:$8 sps:$4 sm:$0xff]  }
 0x122   :  { %918 = vmatprep.subr.bf16.mxu1 %v2505_v39  ;;  %v2565_v39 = vld [vmem:[#allocation6 + $0x3d4] ss:$8 sps:$4 sm:$0xff]  }
 0x125   :  { %919 = vmatpush1.bf16.msra.mxu1 %v2503_v40  ;;  %v2563_v40 = vld [vmem:[#allocation6 + $0x3d0] ss:$8 sps:$4 sm:$0xff]  }
 0x126   :  { %920 = vmatprep.subr.bf16.mxu1 %v2508_v41  ;;  %v2568_v41 = vld [vmem:[#allocation6 + $0x3c4] ss:$8 sps:$4 sm:$0xff]  }
 0x129   :  { %921 = vmatpush1.bf16.msra.mxu1 %v2506_v42  ;;  %v2566_v42 = vld [vmem:[#allocation6 + $0x3c0] ss:$8 sps:$4 sm:$0xff]  }
 0x12a   :  { %922 = vmatprep.subr.bf16.mxu1 %v2511_v43  ;;  %v2571_v43 = vld [vmem:[#allocation6 + $0x3b4] ss:$8 sps:$4 sm:$0xff]  }
 0x12d   :  { %923 = vmatpush2.bf16.msra.mxu1 %v2509_v44  ;;  %v2569_v44 = vld [vmem:[#allocation6 + $0x3b0] ss:$8 sps:$4 sm:$0xff]  }
 0x12e   :  { %924 = vmatprep.subr.bf16.mxu1 %v2514_v45  ;;  %v2574_v45 = vld [vmem:[#allocation6 + $0x3a4] ss:$8 sps:$4 sm:$0xff]  }
 0x131   :  { %925 = vmatpush2.bf16.msra.mxu1 %v2512_v46  ;;  %v2572_v46 = vld [vmem:[#allocation6 + $0x3a0] ss:$8 sps:$4 sm:$0xff]  }
 0x132   :  { %926 = vmatprep.subr.bf16.mxu1 %v2517_v47  ;;  %v679_v47 = vld [vmem:[#allocation9 + $0x4] sm:$0x3] }
 0x135   :  { %927 = vmatpush2.bf16.msra.mxu1 %v2515_v48  ;;  %v684_v48 = vrot.slane %v679_v47, %v2875_v5 }
 0x136   :  { %928 = vmatprep.subr.bf16.mxu1 %v2520_v49  ;;  %v688_v49 = vrot.slane %v679_v47, %v2873_v4 }
 0x139   :  { %929 = vmatpush2.bf16.msra.mxu1 %v2518_v50  ;;  %v691_v50 = vpack.c.bf16 %v684_v48, %v684_v48 }
 0x13a   :  { %930 = vmatprep.subr.bf16.mxu1 %v2523_v51  ;;  %v692_v51 = vpack.c.bf16 %v688_v49, %v688_v49 }
 0x13c   :  { %v701_v53 = vpack.i.b16 %v692_v51, %v692_v51 }
 0x13d   :  { %931 = vmatpush2.bf16.msra.mxu1 %v2521_v52  ;;  %v694_v52 = vpack.i.b16 %v691_v50, %v691_v50 }
 0x13e   :  { %932 = vmatprep.subr.bf16.mxu1 %v2526_v11  ;;  %v706_v57 = vrot.slane %v701_v53, %v2875_v5  ;;  %v2586_v11 = vld [vmem:[#allocation6 + $0x464] ss:$8 sps:$4 sm:$0xff]  }
 0x13f   :  { %v699_v54 = vrot.slane %v694_v52, %v2875_v5 }
 0x141   :  { %933 = vmatpush2.bf16.msra.mxu1 %v2524_v12  ;;  %v2584_v12 = vld [vmem:[#allocation6 + $0x460] ss:$8 sps:$4 sm:$0xff]  }
 0x142   :  { %934 = vmatprep.subr.bf16.mxu1 %v2529_v13  ;;  %v2589_v13 = vld [vmem:[#allocation6 + $0x454] ss:$8 sps:$4 sm:$0xff]  }
 0x145   :  { %935 = vmatpush2.bf16.msra.mxu1 %v2527_v14  ;;  %v2587_v14 = vld [vmem:[#allocation6 + $0x450] ss:$8 sps:$4 sm:$0xff]  }
 0x146   :  { %936 = vmatprep.subr.bf16.mxu1 %v2532_v15  ;;  %v2592_v15 = vld [vmem:[#allocation6 + $0x444] ss:$8 sps:$4 sm:$0xff]  }
 0x149   :  { %937 = vmatpush2.bf16.msra.mxu1 %v2530_v16  ;;  %v2590_v16 = vld [vmem:[#allocation6 + $0x440] ss:$8 sps:$4 sm:$0xff]  }
 0x1cc   :  { %v402_v60 = vpop.f32.mrf.mxu1 }
 0x1cd   :  { %v409_v62 = vpack.c.bf16 %v402_v60, %v402_v60 }
 0x1ce   :  { %v404_v1 = vpop.f32.mrf.mxu1 }
 0x1cf   :  { %v410_v2 = vpack.c.bf16 %v404_v1, %v404_v1  ;;  %v439_v3 = vadd.bf16 %v431_v61, %v409_v62 }
 0x1d0   :  { %v406_v6 = vpop.f32.mrf.mxu1 }
 0x1d1   :  { %v440_v7 = vadd.bf16 %v438_v63, %v410_v2  ;;  %v441_v10 = vmax.bf16 %v2818_v0, %v439_v3 }
 0x1d2   :  { %v407_v8 = vpop.f32.mrf.mxu1 }
 0x1d3   :  { %v442_v9 = vmax.bf16 %v2818_v0, %v440_v7  ;;  %v2577_v7 = vld [vmem:[#allocation6 + $0x394] ss:$8 sps:$4 sm:$0xff]   ;;  %v2575_v8 = vld [vmem:[#allocation6 + $0x390] ss:$8 sps:$4 sm:$0xff]  }
 0x1d5   :  { %668 = vmatprep.mubr.bf16.mxu0 %v442_v9  ;;  %v2580_v9 = vld [vmem:[#allocation6 + $0x384] ss:$8 sps:$4 sm:$0xff]  }
 0x1d6   :  { %669 = vmatmul.mubr.bf16.vlgmr.msra.gmra.mxu0 %v441_v10  ;;  %v2578_v10 = vld [vmem:[#allocation6 + $0x380] ss:$8 sps:$4 sm:$0xff]  }
 0x1d7   :  { %1175 = vmatpush1.bf16.msra.mxu0 %v2533_v17  ;;  %v2595_v17 = vld [vmem:[#allocation6 + $0x434] ss:$8 sps:$4 sm:$0xff]  }
 0x1d8   :  { %1176 = vmatprep.subr.bf16.mxu0 %v2538_v19  ;;  %v2598_v19 = vld [vmem:[#allocation6 + $0x424] ss:$8 sps:$4 sm:$0xff]  }
 0x1db   :  { %1177 = vmatpush1.bf16.msra.mxu0 %v2536_v22  ;;  %v2596_v22 = vld [vmem:[#allocation6 + $0x420] ss:$8 sps:$4 sm:$0xff]  }
 0x1dc   :  { %1178 = vmatprep.subr.bf16.mxu0 %v2541_v23  ;;  %v2601_v23 = vld [vmem:[#allocation6 + $0x414] ss:$8 sps:$4 sm:$0xff]  }
 0x1df   :  { %1179 = vmatpush1.bf16.msra.mxu0 %v2539_v24  ;;  %v2599_v24 = vld [vmem:[#allocation6 + $0x410] ss:$8 sps:$4 sm:$0xff]  }
 0x1e0   :  { %1180 = vmatprep.subr.bf16.mxu0 %v2544_v25  ;;  %v2604_v25 = vld [vmem:[#allocation6 + $0x404] ss:$8 sps:$4 sm:$0xff]  }
 0x1e3   :  { %1181 = vmatpush1.bf16.msra.mxu0 %v2542_v26  ;;  %v2602_v26 = vld [vmem:[#allocation6 + $0x400] ss:$8 sps:$4 sm:$0xff]  }
 0x1e4   :  { %1182 = vmatprep.subr.bf16.mxu0 %v2547_v27  ;;  %v2607_v27 = vld [vmem:[#allocation6 + $0x4f4] ss:$8 sps:$4 sm:$0xff]  }
 0x1e7   :  { %1183 = vmatpush1.bf16.msra.mxu0 %v2545_v28  ;;  %v2605_v28 = vld [vmem:[#allocation6 + $0x4f0] ss:$8 sps:$4 sm:$0xff]  }
 0x1e8   :  { %1184 = vmatprep.subr.bf16.mxu0 %v2550_v29  ;;  %v2610_v29 = vld [vmem:[#allocation6 + $0x4e4] ss:$8 sps:$4 sm:$0xff]  }
 0x1eb   :  { %1185 = vmatpush1.bf16.msra.mxu0 %v2548_v30  ;;  %v2608_v30 = vld [vmem:[#allocation6 + $0x4e0] ss:$8 sps:$4 sm:$0xff]  }
 0x1ec   :  { %1186 = vmatprep.subr.bf16.mxu0 %v2553_v31  ;;  %v2613_v31 = vld [vmem:[#allocation6 + $0x4d4] ss:$8 sps:$4 sm:$0xff]  }
 0x1ef   :  { %1187 = vmatpush1.bf16.msra.mxu0 %v2551_v32  ;;  %v2611_v32 = vld [vmem:[#allocation6 + $0x4d0] ss:$8 sps:$4 sm:$0xff]  }
 0x1f0   :  { %1188 = vmatprep.subr.bf16.mxu0 %v2556_v33  ;;  %v2616_v33 = vld [vmem:[#allocation6 + $0x4c4] ss:$8 sps:$4 sm:$0xff]  }
 0x1f3   :  { %1189 = vmatpush1.bf16.msra.mxu0 %v2554_v34  ;;  %v2614_v34 = vld [vmem:[#allocation6 + $0x4c0] ss:$8 sps:$4 sm:$0xff]  }
 0x1f4   :  { %1190 = vmatprep.subr.bf16.mxu0 %v2559_v35  ;;  %v2619_v35 = vld [vmem:[#allocation6 + $0x4b4] ss:$8 sps:$4 sm:$0xff]  }
 0x1f7   :  { %1191 = vmatpush2.bf16.msra.mxu0 %v2557_v36  ;;  %v2617_v36 = vld [vmem:[#allocation6 + $0x4b0] ss:$8 sps:$4 sm:$0xff]  }
 0x1f8   :  { %1192 = vmatprep.subr.bf16.mxu0 %v2562_v37  ;;  %v949_v37 = vld [vmem:[#allocation9 + $0x6] sm:$0x3] }
 0x1fb   :  { %1193 = vmatpush2.bf16.msra.mxu0 %v2560_v38  ;;  %v954_v38 = vrot.slane %v949_v37, %v2875_v5 }
 0x1fc   :  { %1194 = vmatprep.subr.bf16.mxu0 %v2565_v39  ;;  %v958_v39 = vrot.slane %v949_v37, %v2873_v4 }
 0x1ff   :  { %1195 = vmatpush2.bf16.msra.mxu0 %v2563_v40  ;;  %v961_v40 = vpack.c.bf16 %v954_v38, %v954_v38 }
 0x200   :  { %1196 = vmatprep.subr.bf16.mxu0 %v2568_v41  ;;  %v962_v41 = vpack.c.bf16 %v958_v39, %v958_v39 }
 0x203   :  { %1197 = vmatpush2.bf16.msra.mxu0 %v2566_v42  ;;  %v964_v42 = vpack.i.b16 %v961_v40, %v961_v40 }
 0x204   :  { %1198 = vmatprep.subr.bf16.mxu0 %v2571_v43  ;;  %v971_v43 = vpack.i.b16 %v962_v41, %v962_v41 }
 0x206   :  { %v976_v47 = vrot.slane %v971_v43, %v2875_v5 }
 0x207   :  { %1199 = vmatpush2.bf16.msra.mxu0 %v2569_v44 }
 0x208   :  { %1200 = vmatprep.subr.bf16.mxu0 %v2574_v45  ;;  %v969_v45 = vrot.slane %v964_v42, %v2875_v5 }
 0x20b   :  { %1201 = vmatpush2.bf16.msra.mxu0 %v2572_v46 }
 0x20c   :  { %1202 = vmatprep.subr.bf16.mxu0 %v2577_v7  ;;  %v2637_v7 = vld [vmem:[#allocation6 + $0x554] ss:$8 sps:$4 sm:$0xff]  }
 0x20f   :  { %1203 = vmatpush2.bf16.msra.mxu0 %v2575_v8  ;;  %v2635_v8 = vld [vmem:[#allocation6 + $0x550] ss:$8 sps:$4 sm:$0xff]  }
 0x210   :  { %1204 = vmatprep.subr.bf16.mxu0 %v2580_v9  ;;  %v2640_v9 = vld [vmem:[#allocation6 + $0x544] ss:$8 sps:$4 sm:$0xff]  }
 0x213   :  { %1205 = vmatpush2.bf16.msra.mxu0 %v2578_v10  ;;  %v2638_v10 = vld [vmem:[#allocation6 + $0x540] ss:$8 sps:$4 sm:$0xff]  }
 0x296   :  { %v670_v55 = vpop.f32.mrf.mxu0 }
 0x297   :  { %v677_v56 = vpack.c.bf16 %v670_v55, %v670_v55 }
 0x298   :  { %v672_v58 = vpop.f32.mrf.mxu0 }
 0x299   :  { %v707_v59 = vadd.bf16 %v699_v54, %v677_v56  ;;  %v678_v60 = vpack.c.bf16 %v672_v58, %v672_v58  ;;  %v2622_v56 = vld [vmem:[#allocation6 + $0x4a4] ss:$8 sps:$4 sm:$0xff]   ;;  %v2625_v58 = vld [vmem:[#allocation6 + $0x494] ss:$8 sps:$4 sm:$0xff]  }
 0x29a   :  { %v674_v61 = vpop.f32.mrf.mxu0 }
 0x29b   :  { %v708_v62 = vadd.bf16 %v706_v57, %v678_v60  ;;  %v709_v63 = vadd.bf16 %v707_v59, %v2883_v21  ;;  %v2581_v21 = vld [vmem:[#allocation6 + $0x470] ss:$8 sps:$4 sm:$0xff]   ;;  %v2620_v57 = vld [vmem:[#allocation6 + $0x4a0] ss:$8 sps:$4 sm:$0xff]   ;;  %v2628_v60 = vld [vmem:[#allocation6 + $0x484] ss:$8 sps:$4 sm:$0xff]  }
 0x29c   :  { %v675_v1 = vpop.f32.mrf.mxu0  ;;  %v2623_v59 = vld [vmem:[#allocation6 + $0x490] ss:$8 sps:$4 sm:$0xff]   ;;  %v2626_v61 = vld [vmem:[#allocation6 + $0x480] ss:$8 sps:$4 sm:$0xff]  }
 0x29d   :  { %v710_v2 = vadd.bf16 %v708_v62, %v2881_v20  ;;  %v2903_v6 = vmax.bf16 %v2818_v0, %v709_v63  ;;  %v2583_v20 = vld [vmem:[#allocation6 + $0x474] ss:$8 sps:$4 sm:$0xff]   ;;  %v2629_v62 = vld [vmem:[#allocation6 + $0x570] ss:$8 sps:$4 sm:$0xff]   ;;  %v2634_v1 = vld [vmem:[#allocation6 + $0x564] ss:$8 sps:$4 sm:$0xff]  }
 0x29e   :  { %1444 = vmatprep.subr.bf16.mxu1 %v2583_v20  ;;  %v2631_v63 = vld [vmem:[#allocation6 + $0x574] ss:$8 sps:$4 sm:$0xff]   ;;  %v2641_v20 = vld [vmem:[#allocation6 + $0x530] ss:$8 sps:$4 sm:$0xff]  }
 0x29f   :  { %v2900_v3 = vmax.bf16 %v2818_v0, %v710_v2  ;;  %1712 = vmatprep.subr.bf16.mxu0 %v2631_v63  ;;  %v2632_v2 = vld [vmem:[#allocation6 + $0x560] ss:$8 sps:$4 sm:$0xff]   ;;  %v2686_v63 = vld [vmem:[#allocation7 + $0x18] sm:$0xff]  }
 0x2a1   :  { %938 = vmatprep.mubr.bf16.mxu1 %v2900_v3 }
 0x2a2   :  { %939 = vmatmul.mubr.bf16.vlgmr.msra.gmra.mxu1 %v2903_v6 }
 0x2a3   :  { %1445 = vmatpush1.bf16.msra.mxu1 %v2581_v21  ;;  %v2643_v21 = vld [vmem:[#allocation6 + $0x534] ss:$8 sps:$4 sm:$0xff]  }
 0x2a4   :  { %1446 = vmatprep.subr.bf16.mxu1 %v2586_v11  ;;  %v2646_v11 = vld [vmem:[#allocation6 + $0x524] ss:$8 sps:$4 sm:$0xff]  }
 0x2a7   :  { %1447 = vmatpush1.bf16.msra.mxu1 %v2584_v12  ;;  %v2644_v12 = vld [vmem:[#allocation6 + $0x520] ss:$8 sps:$4 sm:$0xff]  }
 0x2a8   :  { %1448 = vmatprep.subr.bf16.mxu1 %v2589_v13  ;;  %v2649_v13 = vld [vmem:[#allocation6 + $0x514] ss:$8 sps:$4 sm:$0xff]  }
 0x2ab   :  { %1449 = vmatpush1.bf16.msra.mxu1 %v2587_v14  ;;  %v2647_v14 = vld [vmem:[#allocation6 + $0x510] ss:$8 sps:$4 sm:$0xff]  }
 0x2ac   :  { %1450 = vmatprep.subr.bf16.mxu1 %v2592_v15  ;;  %v2652_v15 = vld [vmem:[#allocation6 + $0x504] ss:$8 sps:$4 sm:$0xff]  }
 0x2af   :  { %1451 = vmatpush1.bf16.msra.mxu1 %v2590_v16  ;;  %v2650_v16 = vld [vmem:[#allocation6 + $0x500] ss:$8 sps:$4 sm:$0xff]  }
 0x2b0   :  { %1452 = vmatprep.subr.bf16.mxu1 %v2595_v17  ;;  %v2655_v17 = vld [vmem:[#allocation6 + $0x5f4] ss:$8 sps:$4 sm:$0xff]  }
 0x2b3   :  { %1453 = vmatpush1.bf16.msra.mxu1 %v2593_v18  ;;  %v2653_v18 = vld [vmem:[#allocation6 + $0x5f0] ss:$8 sps:$4 sm:$0xff]  }
 0x2b4   :  { %1454 = vmatprep.subr.bf16.mxu1 %v2598_v19  ;;  %v2658_v19 = vld [vmem:[#allocation6 + $0x5e4] ss:$8 sps:$4 sm:$0xff]  }
 0x2b7   :  { %1455 = vmatpush1.bf16.msra.mxu1 %v2596_v22  ;;  %v2656_v22 = vld [vmem:[#allocation6 + $0x5e0] ss:$8 sps:$4 sm:$0xff]  }
 0x2b8   :  { %1456 = vmatprep.subr.bf16.mxu1 %v2601_v23  ;;  %v2661_v23 = vld [vmem:[#allocation6 + $0x5d4] ss:$8 sps:$4 sm:$0xff]  }
 0x2bb   :  { %1457 = vmatpush1.bf16.msra.mxu1 %v2599_v24  ;;  %v2659_v24 = vld [vmem:[#allocation6 + $0x5d0] ss:$8 sps:$4 sm:$0xff]  }
 0x2bc   :  { %1458 = vmatprep.subr.bf16.mxu1 %v2604_v25  ;;  %v2664_v25 = vld [vmem:[#allocation6 + $0x5c4] ss:$8 sps:$4 sm:$0xff]  }
 0x2bf   :  { %1459 = vmatpush1.bf16.msra.mxu1 %v2602_v26  ;;  %v2662_v26 = vld [vmem:[#allocation6 + $0x5c0] ss:$8 sps:$4 sm:$0xff]  }
 0x2c0   :  { %1460 = vmatprep.subr.bf16.mxu1 %v2607_v27  ;;  %v2667_v27 = vld [vmem:[#allocation6 + $0x5b4] ss:$8 sps:$4 sm:$0xff]  }
 0x2c3   :  { %1461 = vmatpush2.bf16.msra.mxu1 %v2605_v28  ;;  %v2665_v28 = vld [vmem:[#allocation6 + $0x5b0] ss:$8 sps:$4 sm:$0xff]  }
 0x2c4   :  { %1462 = vmatprep.subr.bf16.mxu1 %v2610_v29  ;;  %v2670_v29 = vld [vmem:[#allocation6 + $0x5a4] ss:$8 sps:$4 sm:$0xff]  }
 0x2c7   :  { %1463 = vmatpush2.bf16.msra.mxu1 %v2608_v30  ;;  %v2668_v30 = vld [vmem:[#allocation6 + $0x5a0] ss:$8 sps:$4 sm:$0xff]  }
 0x2c8   :  { %1464 = vmatprep.subr.bf16.mxu1 %v2613_v31  ;;  %v1217_v31 = vld [vmem:[#allocation9 + $0x8] sm:$0x3] }
 0x2cb   :  { %1465 = vmatpush2.bf16.msra.mxu1 %v2611_v32  ;;  %v1222_v32 = vrot.slane %v1217_v31, %v2875_v5 }
 0x2cc   :  { %1466 = vmatprep.subr.bf16.mxu1 %v2616_v33  ;;  %v1226_v33 = vrot.slane %v1217_v31, %v2873_v4  ;;  %v2819_v31 = vmov 0.0  }
 0x2cf   :  { %1467 = vmatpush2.bf16.msra.mxu1 %v2614_v34  ;;  %v1229_v34 = vpack.c.bf16 %v1222_v32, %v1222_v32  ;;  %v2694_v32 = vld [vmem:[#allocation7 + $0xb0] sm:$0xff]  }
 0x2d0   :  { %1468 = vmatprep.subr.bf16.mxu1 %v2619_v35  ;;  %v1230_v35 = vpack.c.bf16 %v1226_v33, %v1226_v33  ;;  %v2695_v33 = vld [vmem:[#allocation7 + $0xa8] sm:$0xff]  }
 0x2d2   :  { %v1239_v37 = vpack.i.b16 %v1230_v35, %v1230_v35  ;;  %v2697_v35 = vld [vmem:[#allocation7 + $0x98] sm:$0xff]  }
 0x2d3   :  { %1469 = vmatpush2.bf16.msra.mxu1 %v2617_v36  ;;  %v1232_v36 = vpack.i.b16 %v1229_v34, %v1229_v34  ;;  %v2696_v34 = vld [vmem:[#allocation7 + $0xa0] sm:$0xff]  }
 0x2d4   :  { %1470 = vmatprep.subr.bf16.mxu1 %v2622_v56  ;;  %v1244_v41 = vrot.slane %v1239_v37, %v2875_v5  ;;  %v2679_v56 = vld [vmem:[#allocation7 + $0x70] sm:$0xff]  }
 0x2d5   :  { %v1237_v38 = vrot.slane %v1232_v36, %v2875_v5  ;;  %v1755_v36 = vld [vmem:[#allocation9 + $0xc] sm:$0x3] }
 0x2d6   :  { %v1760_v37 = vrot.slane %v1755_v36, %v2875_v5 }
 0x2d7   :  { %1471 = vmatpush2.bf16.msra.mxu1 %v2620_v57  ;;  %v2680_v57 = vld [vmem:[#allocation7 + $0x30] sm:$0xff]  }
 0x2d8   :  { %1472 = vmatprep.subr.bf16.mxu1 %v2625_v58  ;;  %v2681_v58 = vld [vmem:[#allocation7 + $0x68] sm:$0xff]  }
 0x2db   :  { %1473 = vmatpush2.bf16.msra.mxu1 %v2623_v59  ;;  %v2682_v59 = vld [vmem:[#allocation7 + $0x28] sm:$0xff]  }
 0x2dc   :  { %1474 = vmatprep.subr.bf16.mxu1 %v2628_v60  ;;  %v2683_v60 = vld [vmem:[#allocation7 + $0x60] sm:$0xff]  }
 0x2df   :  { %1475 = vmatpush2.bf16.msra.mxu1 %v2626_v61  ;;  %v2684_v61 = vld [vmem:[#allocation7 + $0x20] sm:$0xff]  }
 0x362   :  { %v940_v44 = vpop.f32.mrf.mxu1 }
 0x363   :  { %v947_v46 = vpack.c.bf16 %v940_v44, %v940_v44 }
 0x364   :  { %v942_v48 = vpop.f32.mrf.mxu1 }
 0x365   :  { %v948_v49 = vpack.c.bf16 %v942_v48, %v942_v48  ;;  %v977_v50 = vadd.bf16 %v969_v45, %v947_v46 }
 0x366   :  { %v944_v51 = vpop.f32.mrf.mxu1 }
 0x367   :  { %v978_v52 = vadd.bf16 %v976_v47, %v948_v49  ;;  %v979_v55 = vmax.bf16 %v2818_v0, %v977_v50 }
 0x368   :  { %v945_v53 = vpop.f32.mrf.mxu1 }
 0x369   :  { %v980_v54 = vmax.bf16 %v2818_v0, %v978_v52  ;;  %v2673_v52 = vld [vmem:[#allocation6 + $0x594] ss:$8 sps:$4 sm:$0xff]   ;;  %v2671_v53 = vld [vmem:[#allocation6 + $0x590] ss:$8 sps:$4 sm:$0xff]  }
 0x36b   :  { %1206 = vmatprep.mubr.bf16.mxu0 %v980_v54  ;;  %v2676_v54 = vld [vmem:[#allocation6 + $0x584] ss:$8 sps:$4 sm:$0xff]  }
 0x36c   :  { %1207 = vmatmul.mubr.bf16.vlgmr.msra.gmra.mxu0 %v979_v55  ;;  %v2674_v55 = vld [vmem:[#allocation6 + $0x580] ss:$8 sps:$4 sm:$0xff]  }
 0x36d   :  { %1713 = vmatpush1.bf16.msra.mxu0 %v2629_v62  ;;  %v2685_v62 = vld [vmem:[#allocation7 + $0x58] sm:$0xff]  }
 0x36e   :  { %1714 = vmatprep.subr.bf16.mxu0 %v2634_v1  ;;  %v1487_v1 = vld [vmem:[#allocation9 + $0xa] sm:$0x3] }
 0x371   :  { %1715 = vmatpush1.bf16.msra.mxu0 %v2632_v2  ;;  %v1492_v2 = vrot.slane %v1487_v1, %v2875_v5 }
 0x372   :  { %1716 = vmatprep.subr.bf16.mxu0 %v2637_v7  ;;  %v1496_v7 = vrot.slane %v1487_v1, %v2873_v4 }
 0x375   :  { %1717 = vmatpush1.bf16.msra.mxu0 %v2635_v8  ;;  %v1499_v8 = vpack.c.bf16 %v1492_v2, %v1492_v2 }
 0x376   :  { %1718 = vmatprep.subr.bf16.mxu0 %v2640_v9  ;;  %v1500_v9 = vpack.c.bf16 %v1496_v7, %v1496_v7 }
 0x379   :  { %1719 = vmatpush1.bf16.msra.mxu0 %v2638_v10  ;;  %v1502_v10 = vpack.i.b16 %v1499_v8, %v1499_v8 }
 0x37a   :  { %1720 = vmatprep.subr.bf16.mxu0 %v2643_v21  ;;  %v1509_v21 = vpack.i.b16 %v1500_v9, %v1500_v9 }
 0x37d   :  { %1721 = vmatpush1.bf16.msra.mxu0 %v2641_v20 }
 0x37e   :  { %1722 = vmatprep.subr.bf16.mxu0 %v2646_v11  ;;  %v1507_v11 = vrot.slane %v1502_v10, %v2875_v5  ;;  %v2313_v10 = vld [vmem:[#allocation9 + $0xf] ss:$0 sm:$0xff] }
 0x381   :  { %1723 = vmatpush1.bf16.msra.mxu0 %v2644_v12 }
 0x382   :  { %1724 = vmatprep.subr.bf16.mxu0 %v2649_v13  ;;  %v1514_v13 = vrot.slane %v1509_v21, %v2875_v5 }
 0x385   :  { %1725 = vmatpush1.bf16.msra.mxu0 %v2647_v14 }
 0x386   :  { %1726 = vmatprep.subr.bf16.mxu0 %v2652_v15 }
 0x389   :  { %1727 = vmatpush1.bf16.msra.mxu0 %v2650_v16 }
 0x38a   :  { %1728 = vmatprep.subr.bf16.mxu0 %v2655_v17 }
 0x38d   :  { %1729 = vmatpush2.bf16.msra.mxu0 %v2653_v18 }
 0x38e   :  { %1730 = vmatprep.subr.bf16.mxu0 %v2658_v19 }
 0x391   :  { %1731 = vmatpush2.bf16.msra.mxu0 %v2656_v22 }
 0x392   :  { %1732 = vmatprep.subr.bf16.mxu0 %v2661_v23 }
 0x395   :  { %1733 = vmatpush2.bf16.msra.mxu0 %v2659_v24  ;;  %v2687_v24 = vld [vmem:[#allocation7 + $0x50] sm:$0xff]  }
 0x396   :  { %1734 = vmatprep.subr.bf16.mxu0 %v2664_v25  ;;  %v2688_v25 = vld [vmem:[#allocation7 + $0x10] sm:$0xff]  }
 0x399   :  { %1735 = vmatpush2.bf16.msra.mxu0 %v2662_v26  ;;  %v2689_v26 = vld [vmem:[#allocation7 + $0x48] sm:$0xff]  }
 0x39a   :  { %1736 = vmatprep.subr.bf16.mxu0 %v2667_v27  ;;  %v2690_v27 = vld [vmem:[#allocation7 + $0x8] sm:$0xff]  }
 0x39d   :  { %1737 = vmatpush2.bf16.msra.mxu0 %v2665_v28  ;;  %v2691_v28 = vld [vmem:[#allocation7 + $0x40] sm:$0xff]  }
 0x39e   :  { %1738 = vmatprep.subr.bf16.mxu0 %v2670_v29  ;;  %v2692_v29 = vld [vmem:[#allocation7] sm:$0xff]  }
 0x3a1   :  { %1739 = vmatpush2.bf16.msra.mxu0 %v2668_v30  ;;  %v2693_v30 = vld [vmem:[#allocation7 + $0xb8] sm:$0xff]  }
 0x3a2   :  { %1740 = vmatprep.subr.bf16.mxu0 %v2673_v52 }
 0x3a5   :  { %1741 = vmatpush2.bf16.msra.mxu0 %v2671_v53 }
 0x3a6   :  { %1742 = vmatprep.subr.bf16.mxu0 %v2676_v54 }
 0x3a9   :  { %1743 = vmatpush2.bf16.msra.mxu0 %v2674_v55 }
 0x3aa   :  { %2354 = vmatprep.subr.bf16.mxu0 %v2819_v31 }
 0x42c   :  { %v1208_v39 = vpop.f32.mrf.mxu0 }
 0x42d   :  { %v1215_v40 = vpack.c.bf16 %v1208_v39, %v1208_v39  ;;  %v1767_v39 = vpack.c.bf16 %v1760_v37, %v1760_v37 }
 0x42e   :  { %v1210_v42 = vpop.f32.mrf.mxu0 }
 0x42f   :  { %v1245_v43 = vadd.bf16 %v1237_v38, %v1215_v40  ;;  %v1216_v44 = vpack.c.bf16 %v1210_v42, %v1210_v42  ;;  %v1764_v38 = vrot.slane %v1755_v36, %v2873_v4 }
 0x430   :  { %v1212_v45 = vpop.f32.mrf.mxu0 }
 0x431   :  { %v1246_v46 = vadd.bf16 %v1244_v41, %v1216_v44  ;;  %v1247_v47 = vadd.bf16 %v1245_v43, %v2903_v6  ;;  %v2677_v6 = vld [vmem:[#allocation7 + $0x78] sm:$0xff]   ;;  %v1768_v40 = vpack.c.bf16 %v1764_v38, %v1764_v38  ;;  %v1770_v41 = vpack.i.b16 %v1767_v39, %v1767_v39 }
 0x432   :  { %v1213_v48 = vpop.f32.mrf.mxu0  ;;  %2323 = vmatprep.subr.bf16.mxu1 %v2677_v6 }
 0x433   :  { %v1248_v49 = vadd.bf16 %v1246_v46, %v2900_v3  ;;  %v2923_v51 = vmax.bf16 %v2818_v0, %v1247_v47  ;;  %v2678_v3 = vld [vmem:[#allocation7 + $0x38] sm:$0xff]   ;;  %v1777_v42 = vpack.i.b16 %v1768_v40, %v1768_v40  ;;  %v1775_v43 = vrot.slane %v1770_v41, %v2875_v5 }
 0x435   :  { %v2920_v50 = vmax.bf16 %v2818_v0, %v1248_v49  ;;  %v1782_v46 = vrot.slane %v1777_v42, %v2875_v5 }
 0x437   :  { %1476 = vmatprep.mubr.bf16.mxu1 %v2920_v50 }
 0x438   :  { %1477 = vmatmul.mubr.bf16.vlgmr.msra.gmra.mxu1 %v2923_v51 }
 0x439   :  { %2324 = vmatpush3.bf16.msra.mxu1 %v2678_v3 }
 0x43a   :  { %2325 = vmatprep.subr.bf16.mxu1 %v2679_v56  ;;  %v2698_v56 = vld [vmem:[#allocation7 + $0x90] sm:$0xff]  }
 0x43d   :  { %2326 = vmatpush3.bf16.msra.mxu1 %v2680_v57  ;;  %v2699_v57 = vld [vmem:[#allocation7 + $0x88] sm:$0xff]  }
 0x43e   :  { %2327 = vmatprep.subr.bf16.mxu1 %v2681_v58  ;;  %v2700_v58 = vld [vmem:[#allocation7 + $0x80] sm:$0xff]  }
 0x441   :  { %2328 = vmatpush3.bf16.msra.mxu1 %v2682_v59 }
 0x442   :  { %2329 = vmatprep.subr.bf16.mxu1 %v2683_v60 }
 0x445   :  { %2330 = vmatpush3.bf16.msra.mxu1 %v2684_v61 }
 0x446   :  { %2331 = vmatprep.subr.bf16.mxu1 %v2685_v62 }
 0x449   :  { %2332 = vmatpush3.bf16.msra.mxu1 %v2686_v63 }
 0x44a   :  { %2333 = vmatprep.subr.bf16.mxu1 %v2687_v24 }
 0x44d   :  { %2334 = vmatpush3.bf16.msra.mxu1 %v2688_v25 }
 0x44e   :  { %2335 = vmatprep.subr.bf16.mxu1 %v2689_v26 }
 0x451   :  { %2336 = vmatpush3.bf16.msra.mxu1 %v2690_v27 }
 0x452   :  { %2337 = vmatprep.subr.bf16.mxu1 %v2691_v28 }
 0x455   :  { %2338 = vmatpush3.bf16.msra.mxu1 %v2692_v29 }
 0x4f8   :  { %v1478_v20 = vpop.f32.mrf.mxu1 }
 0x4f9   :  { %v1485_v12 = vpack.c.bf16 %v1478_v20, %v1478_v20 }
 0x4fa   :  { %v1480_v14 = vpop.f32.mrf.mxu1 }
 0x4fb   :  { %v1486_v15 = vpack.c.bf16 %v1480_v14, %v1480_v14  ;;  %v1515_v16 = vadd.bf16 %v1507_v11, %v1485_v12 }
 0x4fc   :  { %v1482_v17 = vpop.f32.mrf.mxu1 }
 0x4fd   :  { %v1516_v18 = vadd.bf16 %v1514_v13, %v1486_v15  ;;  %v1517_v23 = vmax.bf16 %v2818_v0, %v1515_v16 }
 0x4fe   :  { %v1483_v19 = vpop.f32.mrf.mxu1 }
 0x4ff   :  { %v1518_v22 = vmax.bf16 %v2818_v0, %v1516_v18  ;;  %v2322_v18 = vld [vmem:[#allocation9 + $0x10] ss:$0 sm:$0xff] }
 0x501   :  { %1744 = vmatprep.mubr.bf16.mxu0 %v1518_v22 }
 0x502   :  { %1745 = vmatmul.mubr.bf16.vlgmr.msra.gmra.mxu0 %v1517_v23 }
 0x503   :  { %2355 = vmatpush3.bf16.msra.mxu0 %v2693_v30  ;;  %2370 = vmatprep.mubr.msk.bf16.mxu0 %vm2820_vm1, %v2819_v31 }
 0x504   :  { %2356 = vmatprep.subr.bf16.mxu0 %v2819_v31 }
 0x507   :  { %2357 = vmatpush3.bf16.msra.mxu0 %v2694_v32 }
 0x508   :  { %2358 = vmatprep.subr.bf16.mxu0 %v2819_v31 }
 0x50b   :  { %2359 = vmatpush3.bf16.msra.mxu0 %v2695_v33 }
 0x50c   :  { %2360 = vmatprep.subr.bf16.mxu0 %v2819_v31 }
 0x50f   :  { %2361 = vmatpush3.bf16.msra.mxu0 %v2696_v34 }
 0x510   :  { %2362 = vmatprep.subr.bf16.mxu0 %v2819_v31 }
 0x513   :  { %2363 = vmatpush3.bf16.msra.mxu0 %v2697_v35 }
 0x514   :  { %2364 = vmatprep.subr.bf16.mxu0 %v2819_v31 }
 0x517   :  { %2365 = vmatpush3.bf16.msra.mxu0 %v2698_v56 }
 0x518   :  { %2366 = vmatprep.subr.bf16.mxu0 %v2819_v31 }
 0x51b   :  { %2367 = vmatpush3.bf16.msra.mxu0 %v2699_v57 }
 0x51c   :  { %2368 = vmatprep.subr.bf16.mxu0 %v2819_v31 }
 0x51f   :  { %2369 = vmatpush3.bf16.msra.mxu0 %v2700_v58 }
 0x5c2   :  { %v1746_v44 = vpop.f32.mrf.mxu0 }
 0x5c3   :  { %v1753_v45 = vpack.c.bf16 %v1746_v44, %v1746_v44 }
 0x5c4   :  { %v1748_v47 = vpop.f32.mrf.mxu0 }
 0x5c5   :  { %v1783_v48 = vadd.bf16 %v1775_v43, %v1753_v45  ;;  %v1754_v49 = vpack.c.bf16 %v1748_v47, %v1748_v47 }
 0x5c6   :  { %v1750_v52 = vpop.f32.mrf.mxu0 }
 0x5c7   :  { %v1784_v53 = vadd.bf16 %v1782_v46, %v1754_v49  ;;  %v1785_v54 = vadd.bf16 %v1783_v48, %v2923_v51  ;;  %v1958_v51 = vld [vmem:[#allocation9 + $0xe] sm:$0x1] }
 0x5c8   :  { %v1751_v55 = vpop.f32.mrf.mxu0  ;;  %v1959_v59 = vpack.c.bf16 %v1958_v51, %v1958_v51 }
 0x5c9   :  { %v1786_v4 = vadd.bf16 %v1784_v53, %v2920_v50  ;;  %v1787_v3 = vmax.bf16 %v2818_v0, %v1785_v54 }
 0x5ca   :  { %v1961_v60 = vpack.i.b16 %v1959_v59, %v1959_v59 }
 0x5cb   :  { %v1788_v6 = vmax.bf16 %v2818_v0, %v1786_v4 }
 0x5cc   :  { %v1966_v63 = vrot.slane %v1961_v60, %v2875_v5 }
 0x5cd   :  { %1949 = vmatprep.mubr.bf16.mxu1 %v1788_v6 }
 0x5ce   :  { %1950 = vmatmul.mubr.bf16.vlgmr.msra.gmra.mxu1 %v1787_v3 }
 0x68e   :  { %v2339_v50 = vpop.f32.mrf.mxu1 }
 0x690   :  { %v2340_v61 = vpop.f32.mrf.mxu1 }
 0x691   :  { %v2341_v62 = vadd.f32 %v2340_v61, %v2339_v50 }
 0x692   :  { %v2342_v1 = vpop.f32.mrf.mxu1 }
 0x693   :  { %v1957_v2 = vpack.c.bf16 %v2341_v62, %v2341_v62 }
 0x694   :  { %v2343_v7 = vpop.f32.mrf.mxu1 }
 0x695   :  { %v1967_v8 = vadd.bf16 %v1966_v63, %v1957_v2 }
 0x697   :  { %v1968_v9 = vmax.bf16 %v2818_v0, %v1967_v8 }
 0x699   :  { %2371 = vmatmul.mubr.bf16.vlgmr.msra.gmra.mxu0 %v1968_v9 }
 0x759   :  { %v2074_v21 = vpop.f32.mrf.mxu0 }
 0x75a   :  { %v2075_v20 = vadd.f32 %v2313_v10, %v2074_v21 }
 0x75b   :  { %v2372_v11 = vpop.f32.mrf.mxu0 }
 0x75c   :  { %2701 = vtanh.f32 %v2075_v20 }
 0x75d   :  { %v2077_v12 = vpop.f32.mrf.mxu0 }
 0x75f   :  { %v2373_v13 = vpop.f32.mrf.mxu0 }
 0x769   :  { %v2702_v14 = vpop.eup %2701 }
 0x76a   :  { %v2082_v15 = vadd.f32 1.0, %v2702_v14 }
 0x76c   :  { %v2083_v16 = vmul.f32 3.5, %v2082_v15 }
 0x76e   :  { %v2084_v17 = vadd.f32 -5.0, %v2083_v16 }
 0x770   :  { %v2085_v5 = vsub.f32 %v2084_v17, %v2075_v20 }
 0x772   :  { %v2092_v19 = vmul.f32 %v2322_v18, %v2085_v5 }
 0x774   :  { %v2093_v22 = vadd.f32 %v2092_v19, %v2075_v20 }
 0x776   :  { %2094 = vst [vmem:[%s2951_s5] sm:$0xff] %v2093_v22 }
 0x777   :  { %2099 = vsyncpa [#allocation3], 1 }
 0x778   :  { %2100 = vsyncpa [#allocation5], 1 }
 0x779   :  { %2101 = vsyncpa [#allocation8], 1 }

</bundles_post_ra>
